<compile_context>
chip_gen: v5e
topology: v5e:2x2
jax: 0.10.0
libtpu: 0.0.40
codegen_flags: <defaults>
</compile_context>

<pallas_src>
import functools

import jax
import jax.numpy as jnp
from jax.experimental import pallas as pl
from jax.experimental.pallas import tpu as pltpu


def critic_kernel(sm_ref, emb_bn_ref, w_ih_ref, w_hh_ref, gate_bias_ref,
                  w1cat_ref, w2cat_ref, vcat_ref, aux_ref,
                  out_ref, enc_ref, proj_ref, *, N, B, H):
    f32 = jnp.float32
    bf16 = jnp.bfloat16

    sm = sm_ref[...]                                   # (N*B, 2): [:,0]=state, [:,1]=mask
    s = sm[:, 0:1]                                     # (N*B, 1), time-major rows n*B + b

    # ---- embedding (Linear(1,H,bias=False)) + BatchNorm1d, rank-1 factorization ----
    # embed = s ⊗ w_emb  =>  per-channel mean = w*mean(s), var = w^2*var(s)  (exact)
    emb_bn = emb_bn_ref[...]                           # (3, H): [w_emb; gamma; beta]
    mean_s = jnp.mean(s)
    var_s = jnp.mean((s - mean_s) ** 2)
    w = emb_bn[0:1, :]
    scale = w * emb_bn[1:2, :] * jax.lax.rsqrt(w * w * var_s + 1e-5)   # (1, H)
    xn = (s - mean_s) * scale + emb_bn[2:3, :]         # (N*B, H) f32

    # ---- LSTM input projection hoisted out of the recurrence (one MXU matmul) ----
    xw = jnp.dot(xn.astype(bf16), w_ih_ref[...],
                 preferred_element_type=f32) + gate_bias_ref[...]      # (N*B, 4H) f32

    # ---- LSTM recurrence (unrolled) + interleaved attention enc projection ----
    w_hh = w_hh_ref[...]                               # (H, 4H) bf16
    w1cat = w1cat_ref[...]                             # (H, 2H) bf16: [W1_g | W1]
    h = jnp.zeros((B, H), f32)
    c = jnp.zeros((B, H), f32)
    # TODO(synk): at production N, chunk this recurrence with lax.fori_loop(unroll=k)
    # (or a grid axis) so live ranges stay bounded and vregs don't spill.
    for t in range(N):                                 # N is static -> full unroll
        lo = t * B
        m = sm[lo:lo + B, 1:2] > 0.0                   # (B, 1) bool  == (t < lens)
        gates = xw[lo:lo + B, :] + jnp.dot(h.astype(bf16), w_hh,
                                           preferred_element_type=f32)  # (B, 4H)
        i_g = jax.nn.sigmoid(gates[:, 0:H])
        f_g = jax.nn.sigmoid(gates[:, H:2 * H])
        g_g = jnp.tanh(gates[:, 2 * H:3 * H])
        o_g = jax.nn.sigmoid(gates[:, 3 * H:4 * H])
        # c is intentionally NOT frozen: past t >= len[b] it only feeds h_new rows
        # that the selects below discard, so outputs are identical and the serial
        # chain is one vselect shorter per step.
        c = f_g * c + i_g * g_g
        h_new = o_g * jnp.tanh(c)
        enc_t = jnp.where(m, h_new, 0.0)               # exactly zero at padded steps
        h = jnp.where(m, h_new, h)                     # freeze h -> packed-seq h_n
        enc_ref[lo:lo + B, :] = enc_t
        # enc projection for attention: no serial dependency -> free MXU filler
        proj_ref[lo:lo + B, :] = jnp.dot(enc_t.astype(bf16), w1cat,
                                         preferred_element_type=f32)

    # ---- Bahdanau attention (softmax=False branch), per-t over (B,H) slices ----
    # enc pad rows are exactly zero and att is multiplied by the mask, so the
    # reference's `-1e10 * (1 - mask)` terms are mathematical no-ops here.
    w2cat = w2cat_ref[...]                             # (H, 2H) bf16: [W2_g | W2]
    vcat = vcat_ref[...]                               # (H, 2)  bf16: [v_g | v]

    vg_b = aux_ref[N]                                  # SMEM scalar
    w2_d_g = jnp.dot(h.astype(bf16), w2cat[:, 0:H],
                     preferred_element_type=f32)       # (B, H)
    glimpse = h                                        # + dec_last_hid_state
    for t in range(N):
        lo = t * B
        tanh_g = jnp.tanh(proj_ref[lo:lo + B, 0:H] + w2_d_g)
        sc_g = jnp.dot(tanh_g.astype(bf16), vcat,
                       preferred_element_type=f32)[:, 0:1] + vg_b      # (B, 1)
        glimpse = glimpse + sc_g * enc_ref[lo:lo + B, :]

    v_b = aux_ref[N + 1]
    w2_d = jnp.dot(glimpse.astype(bf16), w2cat[:, H:2 * H],
                   preferred_element_type=f32)         # (B, H)
    pred = jnp.zeros((B, 1), f32)
    for t in range(N):
        lo = t * B
        tanh_o = jnp.tanh(proj_ref[lo:lo + B, H:2 * H] + w2_d)
        sc = jnp.dot(tanh_o.astype(bf16), vcat,
                     preferred_element_type=f32)[:, 1:2] + v_b         # (B, 1)
        att_t = sc * sm[lo:lo + B, 1:2]                # att = score * mask
        pred = pred + aux_ref[t] * att_t               # folded dense2∘dense1 weight
    out_ref[...] = pred + aux_ref[N + 2]               # folded bias


def prepare_params(params):
    """One-time packing of torch-layout parameters into kernel operands."""
    f32 = jnp.float32
    bf16 = jnp.bfloat16
    N = params["d1_w"].shape[0]
    emb_bn = jnp.concatenate([params["w_emb"], params["gamma"], params["beta"]],
                             axis=0).astype(f32)                               # (3, H)
    gate_bias = (params["b_ih"] + params["b_hh"]).astype(f32)                  # (1, 4H)
    w1cat = jnp.concatenate([params["w1g_t"], params["w1_t"]], axis=1).astype(bf16)
    w2cat = jnp.concatenate([params["w2g_t"], params["w2_t"]], axis=1).astype(bf16)
    vcat = jnp.concatenate([params["vg_w"].T, params["v_w"].T], axis=1).astype(bf16)
    # dense2(dense1(x)) is affine -> fold exactly into (N,) weight + scalar bias
    d21_w = (params["d2_w"] @ params["d1_w"]).reshape(N)
    d21_b = (params["d2_w"] @ params["d1_b"])[0, 0] + params["d2_b"][0, 0]
    aux = jnp.concatenate(
        [d21_w, jnp.stack([params["vg_b"][0, 0], params["v_b"][0, 0], d21_b])]
    ).astype(f32)                                                              # (N+3,)
    return dict(emb_bn=emb_bn,
                w_ih=params["w_ih_t"].astype(bf16),
                w_hh=params["w_hh_t"].astype(bf16),
                gate_bias=gate_bias, w1cat=w1cat, w2cat=w2cat,
                vcat=vcat, aux=aux)


def critic_forward(prep, states, mask):
    """states: (B, N) f32 (== states_batch[..., 0]); mask: (B, N) len_mask."""
    B, N = states.shape
    H = prep["emb_bn"].shape[1]
    f32 = jnp.float32

    # single packed per-call input: time-major rows n*B + b; lane 0 = state, 1 = mask
    sm = jnp.stack([states.T.reshape(N * B), mask.T.reshape(N * B)],
                   axis=1).astype(f32)                                         # (N*B, 2)

    vmem = pltpu.MemorySpace.VMEM
    smem = pltpu.MemorySpace.SMEM
    kernel = functools.partial(critic_kernel, N=N, B=B, H=H)
    # TODO(synk): at production B, add a grid over batch tiles with
    # dimension_semantics=("parallel",) (to use both v7x TensorCores), constant
    # index_maps for the weight operands, and B_tile sized to v7x's 64 MiB VMEM.
    out = pl.pallas_call(
        kernel,
        out_shape=jax.ShapeDtypeStruct((B, 1), f32),
        in_specs=[pl.BlockSpec(memory_space=vmem)] * 8
                 + [pl.BlockSpec(memory_space=smem)],
        out_specs=pl.BlockSpec(memory_space=vmem),
        scratch_shapes=[pltpu.VMEM((N * B, H), f32),        # encoder outputs
                        pltpu.VMEM((N * B, 2 * H), f32)],   # enc @ [W1_g | W1]
    )(sm, prep["emb_bn"], prep["w_ih"], prep["w_hh"], prep["gate_bias"],
      prep["w1cat"], prep["w2cat"], prep["vcat"], prep["aux"])
    return out[:, 0]                                    # (B,) == pred_reward.squeeze(-1)


def critic_forward_ref(params, states, lens, mask):
    """Pure-JAX full-f32 reference with the original (unfolded) parameters."""
    B, N = states.shape
    H = params["w_emb"].shape[1]
    embed = states[:, :, None] * params["w_emb"][None, :, :]        # (B, N, H)
    mean = jnp.mean(embed, axis=(0, 1), keepdims=True)
    var = jnp.mean((embed - mean) ** 2, axis=(0, 1), keepdims=True)
    xn = ((embed - mean) / jnp.sqrt(var + 1e-5)
          * params["gamma"][None] + params["beta"][None])

    def step(carry, x_t):
        h, c, t = carry
        gates = (x_t @ params["w_ih_t"] + params["b_ih"]
                 + h @ params["w_hh_t"] + params["b_hh"])
        i = jax.nn.sigmoid(gates[:, :H]); f = jax.nn.sigmoid(gates[:, H:2 * H])
        g = jnp.tanh(gates[:, 2 * H:3 * H]); o = jax.nn.sigmoid(gates[:, 3 * H:])
        c_new = f * c + i * g
        h_new = o * jnp.tanh(c_new)
        valid = (t < lens).astype(jnp.float32)[:, None]
        return (valid * h_new + (1 - valid) * h,
                valid * c_new + (1 - valid) * c,
                t + 1), valid * h_new

    (h_last, _, _), enc_t = jax.lax.scan(
        step, (jnp.zeros((B, H)), jnp.zeros((B, H)), jnp.int32(0)),
        jnp.swapaxes(xn, 0, 1))
    enc = jnp.swapaxes(enc_t, 0, 1)                                 # (B, N, H)

    sg = jnp.sum(jnp.tanh(enc @ params["w1g_t"]
                          + (h_last @ params["w2g_t"])[:, None, :])
                 * params["vg_w"][None], axis=-1) + params["vg_b"][0, 0]
    sg = sg - 1e10 * (1 - mask)
    glimpse = jnp.einsum('bn,bnh->bh', sg, enc) + h_last
    s = jnp.sum(jnp.tanh(enc @ params["w1_t"]
                         + (glimpse @ params["w2_t"])[:, None, :])
                * params["v_w"][None], axis=-1) + params["v_b"][0, 0]
    s = s - 1e10 * (1 - mask)
    att = s * mask
    x = att @ params["d1_w"].T + params["d1_b"].T
    pred = x @ params["d2_w"].T + params["d2_b"][0, 0]
    return pred[:, 0]


def init_params(key, H, N):
    ks = jax.random.split(key, 17)

    def u(k, shape, a):
        return jax.random.uniform(k, shape, jnp.float32, -a, a)

    s = float(H) ** -0.5
    return dict(
        w_emb=u(ks[0], (1, H), 0.5),                # embedding.weight.T  (1, H)
        gamma=jnp.ones((1, H), jnp.float32),         # BatchNorm1d default init
        beta=jnp.zeros((1, H), jnp.float32),
        w_ih_t=u(ks[1], (H, 4 * H), s),              # LSTM weight_ih.T, gates [i,f,g,o]
        w_hh_t=u(ks[2], (H, 4 * H), s),
        b_ih=u(ks[3], (1, 4 * H), s),
        b_hh=u(ks[4], (1, 4 * H), s),
        w1g_t=u(ks[5], (H, H), s),                   # attention W1_g.T etc.
        w2g_t=u(ks[6], (H, H), s),
        vg_w=u(ks[7], (1, H), s),
        vg_b=u(ks[8], (1, 1), s),
        w1_t=u(ks[9], (H, H), s),
        w2_t=u(ks[10], (H, H), s),
        v_w=u(ks[11], (1, H), s),
        v_b=u(ks[12], (1, 1), s),
        d1_w=u(ks[13], (N, N), 0.08),                # dense1.weight (torch layout)
        d1_b=u(ks[14], (N, 1), 0.08),
        d2_w=u(ks[15], (1, N), 0.08),                # dense2.weight
        d2_b=u(ks[16], (1, 1), 0.08),
    )


if __name__ == "__main__":
    B, N, H = 8, 8, 32   # batch, max_num_items, hid_dim
    key = jax.random.PRNGKey(0)
    pkey, skey = jax.random.split(key)
    params = init_params(pkey, H, N)
    prep = prepare_params(params)        # one-time parameter packing (hoisted)

    # states_batch is (B, N, 1) in torch; trailing singleton carried implicitly.
    states = jax.random.normal(skey, (B, N), jnp.float32)
    lens = jnp.array([8, 5, 3, 8, 1, 6, 7, 4], dtype=jnp.int32)
    mask = (jnp.arange(N)[None, :] < lens[:, None]).astype(jnp.float32)

    out = critic_forward(prep, states, mask)
    jax.block_until_ready(out)
    assert out.shape == (B,)

    ref = critic_forward_ref(params, states, lens, mask)
    if not jnp.allclose(out, ref, atol=5e-2, rtol=5e-2):
        raise AssertionError(f"mismatch: kernel={out} ref={ref}")

    print("KERNEL_OK")
</pallas_src>

<mosaic_0001>
module attributes {stable_mosaic.version = 11 : i64} {
  func.func @critic_kernel(%arg0: memref<64x2xf32, #tpu.memory_space<vmem>>, %arg1: memref<3x32xf32, #tpu.memory_space<vmem>>, %arg2: memref<32x128xbf16, #tpu.memory_space<vmem>>, %arg3: memref<32x128xbf16, #tpu.memory_space<vmem>>, %arg4: memref<1x128xf32, #tpu.memory_space<vmem>>, %arg5: memref<32x64xbf16, #tpu.memory_space<vmem>>, %arg6: memref<32x64xbf16, #tpu.memory_space<vmem>>, %arg7: memref<32x2xbf16, #tpu.memory_space<vmem>>, %arg8: memref<11xf32, #tpu.memory_space<smem>>, %arg9: memref<8x1xf32, #tpu.memory_space<vmem>>, %arg10: memref<64x32xf32, #tpu.memory_space<vmem>>, %arg11: memref<64x64xf32, #tpu.memory_space<vmem>>) attributes {dimension_semantics = [], scalar_prefetch = 0 : i64, scratch_operands = 2 : i64, tpu.core_type = #tpu.core_type<tc>} {
    %c0 = arith.constant 0 : index
    %c0_0 = arith.constant 0 : index
    %0 = vector.load %arg0[%c0, %c0_0] : memref<64x2xf32, #tpu.memory_space<vmem>>, vector<64x2xf32>
    %1 = vector.extract_strided_slice %0 {offsets = [0, 0], sizes = [64, 1], strides = [1, 1]} : vector<64x2xf32> to vector<64x1xf32>
    %c0_1 = arith.constant 0 : index
    %c0_2 = arith.constant 0 : index
    %2 = vector.load %arg1[%c0_1, %c0_2] : memref<3x32xf32, #tpu.memory_space<vmem>>, vector<3x32xf32>
    %3 = vector.shape_cast %1 : vector<64x1xf32> to vector<1x64x1xf32>
    %cst = arith.constant dense<0.000000e+00> : vector<1xf32>
    %4 = vector.multi_reduction <add>, %3, %cst [1, 2] : vector<1x64x1xf32> to vector<1xf32>
    %5 = vector.shape_cast %4 : vector<1xf32> to vector<1x1x1xf32>
    %6 = vector.extract %5[0, 0, 0] : f32 from vector<1x1x1xf32>
    %cst_3 = arith.constant 6.400000e+01 : f32
    %7 = arith.divf %6, %cst_3 : f32
    %8 = vector.broadcast %7 : f32 to vector<64x1xf32>
    %9 = arith.subf %1, %8 : vector<64x1xf32>
    %10 = arith.mulf %9, %9 : vector<64x1xf32>
    %11 = vector.shape_cast %10 : vector<64x1xf32> to vector<1x64x1xf32>
    %cst_4 = arith.constant dense<0.000000e+00> : vector<1xf32>
    %12 = vector.multi_reduction <add>, %11, %cst_4 [1, 2] : vector<1x64x1xf32> to vector<1xf32>
    %13 = vector.shape_cast %12 : vector<1xf32> to vector<1x1x1xf32>
    %14 = vector.extract %13[0, 0, 0] : f32 from vector<1x1x1xf32>
    %cst_5 = arith.constant 6.400000e+01 : f32
    %15 = arith.divf %14, %cst_5 : f32
    %16 = vector.extract_strided_slice %2 {offsets = [0, 0], sizes = [1, 32], strides = [1, 1]} : vector<3x32xf32> to vector<1x32xf32>
    %17 = vector.extract_strided_slice %2 {offsets = [1, 0], sizes = [1, 32], strides = [1, 1]} : vector<3x32xf32> to vector<1x32xf32>
    %18 = arith.mulf %16, %17 : vector<1x32xf32>
    %19 = arith.mulf %16, %16 : vector<1x32xf32>
    %20 = vector.broadcast %15 : f32 to vector<1x32xf32>
    %21 = arith.mulf %19, %20 : vector<1x32xf32>
    %cst_6 = arith.constant 9.99999974E-6 : f32
    %22 = vector.broadcast %cst_6 : f32 to vector<1x32xf32>
    %23 = arith.addf %21, %22 : vector<1x32xf32>
    %24 = math.rsqrt %23 : vector<1x32xf32>
    %25 = arith.mulf %18, %24 : vector<1x32xf32>
    %26 = vector.broadcast %7 : f32 to vector<64x1xf32>
    %27 = arith.subf %1, %26 : vector<64x1xf32>
    %28 = vector.broadcast %27 : vector<64x1xf32> to vector<64x32xf32>
    %29 = vector.broadcast %25 : vector<1x32xf32> to vector<64x32xf32>
    %30 = arith.mulf %28, %29 : vector<64x32xf32>
    %31 = vector.extract_strided_slice %2 {offsets = [2, 0], sizes = [1, 32], strides = [1, 1]} : vector<3x32xf32> to vector<1x32xf32>
    %32 = vector.broadcast %31 : vector<1x32xf32> to vector<64x32xf32>
    %33 = arith.addf %30, %32 : vector<64x32xf32>
    %34 = arith.truncf %33 : vector<64x32xf32> to vector<64x32xbf16>
    %c0_7 = arith.constant 0 : index
    %c0_8 = arith.constant 0 : index
    %35 = vector.load %arg2[%c0_7, %c0_8] : memref<32x128xbf16, #tpu.memory_space<vmem>>, vector<32x128xbf16>
    %cst_9 = arith.constant dense<0.000000e+00> : vector<64x128xf32>
    %36 = tpu.matmul %34, %35, %cst_9 {dimension_numbers = #tpu.dot_dimension_numbers<[1], [0], [0], [1], [0, 0, 1, 1], [], []>} : vector<64x32xbf16>, vector<32x128xbf16>, vector<64x128xf32> -> vector<64x128xf32>
    %c0_10 = arith.constant 0 : index
    %c0_11 = arith.constant 0 : index
    %37 = vector.load %arg4[%c0_10, %c0_11] : memref<1x128xf32, #tpu.memory_space<vmem>>, vector<1x128xf32>
    %38 = vector.broadcast %37 : vector<1x128xf32> to vector<64x128xf32>
    %39 = arith.addf %36, %38 : vector<64x128xf32>
    %c0_12 = arith.constant 0 : index
    %c0_13 = arith.constant 0 : index
    %40 = vector.load %arg3[%c0_12, %c0_13] : memref<32x128xbf16, #tpu.memory_space<vmem>>, vector<32x128xbf16>
    %c0_14 = arith.constant 0 : index
    %c0_15 = arith.constant 0 : index
    %41 = vector.load %arg5[%c0_14, %c0_15] : memref<32x64xbf16, #tpu.memory_space<vmem>>, vector<32x64xbf16>
    %cst_16 = arith.constant 0.000000e+00 : f32
    %42 = vector.broadcast %cst_16 : f32 to vector<8x32xf32>
    %cst_17 = arith.constant 0.000000e+00 : f32
    %43 = vector.broadcast %cst_17 : f32 to vector<8x32xf32>
    %44 = vector.extract_strided_slice %0 {offsets = [0, 1], sizes = [8, 1], strides = [1, 1]} : vector<64x2xf32> to vector<8x1xf32>
    %cst_18 = arith.constant 0.000000e+00 : f32
    %45 = vector.broadcast %cst_18 : f32 to vector<8x1xf32>
    %46 = arith.cmpf ogt, %44, %45 : vector<8x1xf32>
    %47 = vector.extract_strided_slice %39 {offsets = [0, 0], sizes = [8, 128], strides = [1, 1]} : vector<64x128xf32> to vector<8x128xf32>
    %48 = arith.truncf %42 : vector<8x32xf32> to vector<8x32xbf16>
    %cst_19 = arith.constant dense<0.000000e+00> : vector<8x128xf32>
    %49 = tpu.matmul %48, %40, %cst_19 {dimension_numbers = #tpu.dot_dimension_numbers<[1], [0], [0], [1], [0, 0, 1, 1], [], []>} : vector<8x32xbf16>, vector<32x128xbf16>, vector<8x128xf32> -> vector<8x128xf32>
    %50 = arith.addf %47, %49 : vector<8x128xf32>
    %51 = vector.extract_strided_slice %50 {offsets = [0, 0], sizes = [8, 32], strides = [1, 1]} : vector<8x128xf32> to vector<8x32xf32>
    %52 = arith.negf %51 : vector<8x32xf32>
    %53 = math.exp %52 : vector<8x32xf32>
    %cst_20 = arith.constant 1.000000e+00 : f32
    %54 = vector.broadcast %cst_20 : f32 to vector<8x32xf32>
    %55 = arith.addf %54, %53 : vector<8x32xf32>
    %56 = arith.divf %54, %55 : vector<8x32xf32>
    %57 = vector.extract_strided_slice %50 {offsets = [0, 32], sizes = [8, 32], strides = [1, 1]} : vector<8x128xf32> to vector<8x32xf32>
    %58 = arith.negf %57 : vector<8x32xf32>
    %59 = math.exp %58 : vector<8x32xf32>
    %cst_21 = arith.constant 1.000000e+00 : f32
    %60 = vector.broadcast %cst_21 : f32 to vector<8x32xf32>
    %61 = arith.addf %60, %59 : vector<8x32xf32>
    %62 = arith.divf %60, %61 : vector<8x32xf32>
    %63 = vector.extract_strided_slice %50 {offsets = [0, 64], sizes = [8, 32], strides = [1, 1]} : vector<8x128xf32> to vector<8x32xf32>
    %64 = math.tanh %63 : vector<8x32xf32>
    %65 = vector.extract_strided_slice %50 {offsets = [0, 96], sizes = [8, 32], strides = [1, 1]} : vector<8x128xf32> to vector<8x32xf32>
    %66 = arith.negf %65 : vector<8x32xf32>
    %67 = math.exp %66 : vector<8x32xf32>
    %cst_22 = arith.constant 1.000000e+00 : f32
    %68 = vector.broadcast %cst_22 : f32 to vector<8x32xf32>
    %69 = arith.addf %68, %67 : vector<8x32xf32>
    %70 = arith.divf %68, %69 : vector<8x32xf32>
    %71 = arith.mulf %62, %43 : vector<8x32xf32>
    %72 = arith.mulf %56, %64 : vector<8x32xf32>
    %73 = arith.addf %71, %72 : vector<8x32xf32>
    %74 = math.tanh %73 : vector<8x32xf32>
    %75 = arith.mulf %70, %74 : vector<8x32xf32>
    %cst_23 = arith.constant 0.000000e+00 : f32
    %76 = vector.shape_cast %46 : vector<8x1xi1> to vector<8x1xi1>
    %77 = vector.broadcast %76 : vector<8x1xi1> to vector<8x32xi1>
    %78 = vector.broadcast %cst_23 : f32 to vector<8x32xf32>
    %79 = arith.select %77, %75, %78 : vector<8x32xi1>, vector<8x32xf32>
    %80 = vector.shape_cast %46 : vector<8x1xi1> to vector<8x1xi1>
    %81 = vector.broadcast %80 : vector<8x1xi1> to vector<8x32xi1>
    %82 = arith.select %81, %75, %42 : vector<8x32xi1>, vector<8x32xf32>
    %c0_24 = arith.constant 0 : index
    %c0_25 = arith.constant 0 : index
    %83 = vector.load %arg10[%c0_24, %c0_25] : memref<64x32xf32, #tpu.memory_space<vmem>>, vector<8x32xf32>
    tpu.vector_store %arg10[%c0_24, %c0_25], %79 {strides = array<i32>} : memref<64x32xf32, #tpu.memory_space<vmem>>, vector<8x32xf32>,
    %84 = arith.truncf %79 : vector<8x32xf32> to vector<8x32xbf16>
    %cst_26 = arith.constant dense<0.000000e+00> : vector<8x64xf32>
    %85 = tpu.matmul %84, %41, %cst_26 {dimension_numbers = #tpu.dot_dimension_numbers<[1], [0], [0], [1], [0, 0, 1, 1], [], []>} : vector<8x32xbf16>, vector<32x64xbf16>, vector<8x64xf32> -> vector<8x64xf32>
    %c0_27 = arith.constant 0 : index
    %c0_28 = arith.constant 0 : index
    %86 = vector.load %arg11[%c0_27, %c0_28] : memref<64x64xf32, #tpu.memory_space<vmem>>, vector<8x64xf32>
    tpu.vector_store %arg11[%c0_27, %c0_28], %85 {strides = array<i32>} : memref<64x64xf32, #tpu.memory_space<vmem>>, vector<8x64xf32>,
    %87 = vector.extract_strided_slice %0 {offsets = [8, 1], sizes = [8, 1], strides = [1, 1]} : vector<64x2xf32> to vector<8x1xf32>
    %cst_29 = arith.constant 0.000000e+00 : f32
    %88 = vector.broadcast %cst_29 : f32 to vector<8x1xf32>
    %89 = arith.cmpf ogt, %87, %88 : vector<8x1xf32>
    %90 = vector.extract_strided_slice %39 {offsets = [8, 0], sizes = [8, 128], strides = [1, 1]} : vector<64x128xf32> to vector<8x128xf32>
    %91 = arith.truncf %82 : vector<8x32xf32> to vector<8x32xbf16>
    %cst_30 = arith.constant dense<0.000000e+00> : vector<8x128xf32>
    %92 = tpu.matmul %91, %40, %cst_30 {dimension_numbers = #tpu.dot_dimension_numbers<[1], [0], [0], [1], [0, 0, 1, 1], [], []>} : vector<8x32xbf16>, vector<32x128xbf16>, vector<8x128xf32> -> vector<8x128xf32>
    %93 = arith.addf %90, %92 : vector<8x128xf32>
    %94 = vector.extract_strided_slice %93 {offsets = [0, 0], sizes = [8, 32], strides = [1, 1]} : vector<8x128xf32> to vector<8x32xf32>
    %95 = arith.negf %94 : vector<8x32xf32>
    %96 = math.exp %95 : vector<8x32xf32>
    %cst_31 = arith.constant 1.000000e+00 : f32
    %97 = vector.broadcast %cst_31 : f32 to vector<8x32xf32>
    %98 = arith.addf %97, %96 : vector<8x32xf32>
    %99 = arith.divf %97, %98 : vector<8x32xf32>
    %100 = vector.extract_strided_slice %93 {offsets = [0, 32], sizes = [8, 32], strides = [1, 1]} : vector<8x128xf32> to vector<8x32xf32>
    %101 = arith.negf %100 : vector<8x32xf32>
    %102 = math.exp %101 : vector<8x32xf32>
    %cst_32 = arith.constant 1.000000e+00 : f32
    %103 = vector.broadcast %cst_32 : f32 to vector<8x32xf32>
    %104 = arith.addf %103, %102 : vector<8x32xf32>
    %105 = arith.divf %103, %104 : vector<8x32xf32>
    %106 = vector.extract_strided_slice %93 {offsets = [0, 64], sizes = [8, 32], strides = [1, 1]} : vector<8x128xf32> to vector<8x32xf32>
    %107 = math.tanh %106 : vector<8x32xf32>
    %108 = vector.extract_strided_slice %93 {offsets = [0, 96], sizes = [8, 32], strides = [1, 1]} : vector<8x128xf32> to vector<8x32xf32>
    %109 = arith.negf %108 : vector<8x32xf32>
    %110 = math.exp %109 : vector<8x32xf32>
    %cst_33 = arith.constant 1.000000e+00 : f32
    %111 = vector.broadcast %cst_33 : f32 to vector<8x32xf32>
    %112 = arith.addf %111, %110 : vector<8x32xf32>
    %113 = arith.divf %111, %112 : vector<8x32xf32>
    %114 = arith.mulf %105, %73 : vector<8x32xf32>
    %115 = arith.mulf %99, %107 : vector<8x32xf32>
    %116 = arith.addf %114, %115 : vector<8x32xf32>
    %117 = math.tanh %116 : vector<8x32xf32>
    %118 = arith.mulf %113, %117 : vector<8x32xf32>
    %cst_34 = arith.constant 0.000000e+00 : f32
    %119 = vector.shape_cast %89 : vector<8x1xi1> to vector<8x1xi1>
    %120 = vector.broadcast %119 : vector<8x1xi1> to vector<8x32xi1>
    %121 = vector.broadcast %cst_34 : f32 to vector<8x32xf32>
    %122 = arith.select %120, %118, %121 : vector<8x32xi1>, vector<8x32xf32>
    %123 = vector.shape_cast %89 : vector<8x1xi1> to vector<8x1xi1>
    %124 = vector.broadcast %123 : vector<8x1xi1> to vector<8x32xi1>
    %125 = arith.select %124, %118, %82 : vector<8x32xi1>, vector<8x32xf32>
    %c8 = arith.constant 8 : index
    %c0_35 = arith.constant 0 : index
    %126 = vector.load %arg10[%c8, %c0_35] : memref<64x32xf32, #tpu.memory_space<vmem>>, vector<8x32xf32>
    tpu.vector_store %arg10[%c8, %c0_35], %122 {strides = array<i32>} : memref<64x32xf32, #tpu.memory_space<vmem>>, vector<8x32xf32>,
    %127 = arith.truncf %122 : vector<8x32xf32> to vector<8x32xbf16>
    %cst_36 = arith.constant dense<0.000000e+00> : vector<8x64xf32>
    %128 = tpu.matmul %127, %41, %cst_36 {dimension_numbers = #tpu.dot_dimension_numbers<[1], [0], [0], [1], [0, 0, 1, 1], [], []>} : vector<8x32xbf16>, vector<32x64xbf16>, vector<8x64xf32> -> vector<8x64xf32>
    %c8_37 = arith.constant 8 : index
    %c0_38 = arith.constant 0 : index
    %129 = vector.load %arg11[%c8_37, %c0_38] : memref<64x64xf32, #tpu.memory_space<vmem>>, vector<8x64xf32>
    tpu.vector_store %arg11[%c8_37, %c0_38], %128 {strides = array<i32>} : memref<64x64xf32, #tpu.memory_space<vmem>>, vector<8x64xf32>,
    %130 = vector.extract_strided_slice %0 {offsets = [16, 1], sizes = [8, 1], strides = [1, 1]} : vector<64x2xf32> to vector<8x1xf32>
    %cst_39 = arith.constant 0.000000e+00 : f32
    %131 = vector.broadcast %cst_39 : f32 to vector<8x1xf32>
    %132 = arith.cmpf ogt, %130, %131 : vector<8x1xf32>
    %133 = vector.extract_strided_slice %39 {offsets = [16, 0], sizes = [8, 128], strides = [1, 1]} : vector<64x128xf32> to vector<8x128xf32>
    %134 = arith.truncf %125 : vector<8x32xf32> to vector<8x32xbf16>
    %cst_40 = arith.constant dense<0.000000e+00> : vector<8x128xf32>
    %135 = tpu.matmul %134, %40, %cst_40 {dimension_numbers = #tpu.dot_dimension_numbers<[1], [0], [0], [1], [0, 0, 1, 1], [], []>} : vector<8x32xbf16>, vector<32x128xbf16>, vector<8x128xf32> -> vector<8x128xf32>
    %136 = arith.addf %133, %135 : vector<8x128xf32>
    %137 = vector.extract_strided_slice %136 {offsets = [0, 0], sizes = [8, 32], strides = [1, 1]} : vector<8x128xf32> to vector<8x32xf32>
    %138 = arith.negf %137 : vector<8x32xf32>
    %139 = math.exp %138 : vector<8x32xf32>
    %cst_41 = arith.constant 1.000000e+00 : f32
    %140 = vector.broadcast %cst_41 : f32 to vector<8x32xf32>
    %141 = arith.addf %140, %139 : vector<8x32xf32>
    %142 = arith.divf %140, %141 : vector<8x32xf32>
    %143 = vector.extract_strided_slice %136 {offsets = [0, 32], sizes = [8, 32], strides = [1, 1]} : vector<8x128xf32> to vector<8x32xf32>
    %144 = arith.negf %143 : vector<8x32xf32>
    %145 = math.exp %144 : vector<8x32xf32>
    %cst_42 = arith.constant 1.000000e+00 : f32
    %146 = vector.broadcast %cst_42 : f32 to vector<8x32xf32>
    %147 = arith.addf %146, %145 : vector<8x32xf32>
    %148 = arith.divf %146, %147 : vector<8x32xf32>
    %149 = vector.extract_strided_slice %136 {offsets = [0, 64], sizes = [8, 32], strides = [1, 1]} : vector<8x128xf32> to vector<8x32xf32>
    %150 = math.tanh %149 : vector<8x32xf32>
    %151 = vector.extract_strided_slice %136 {offsets = [0, 96], sizes = [8, 32], strides = [1, 1]} : vector<8x128xf32> to vector<8x32xf32>
    %152 = arith.negf %151 : vector<8x32xf32>
    %153 = math.exp %152 : vector<8x32xf32>
    %cst_43 = arith.constant 1.000000e+00 : f32
    %154 = vector.broadcast %cst_43 : f32 to vector<8x32xf32>
    %155 = arith.addf %154, %153 : vector<8x32xf32>
    %156 = arith.divf %154, %155 : vector<8x32xf32>
    %157 = arith.mulf %148, %116 : vector<8x32xf32>
    %158 = arith.mulf %142, %150 : vector<8x32xf32>
    %159 = arith.addf %157, %158 : vector<8x32xf32>
    %160 = math.tanh %159 : vector<8x32xf32>
    %161 = arith.mulf %156, %160 : vector<8x32xf32>
    %cst_44 = arith.constant 0.000000e+00 : f32
    %162 = vector.shape_cast %132 : vector<8x1xi1> to vector<8x1xi1>
    %163 = vector.broadcast %162 : vector<8x1xi1> to vector<8x32xi1>
    %164 = vector.broadcast %cst_44 : f32 to vector<8x32xf32>
    %165 = arith.select %163, %161, %164 : vector<8x32xi1>, vector<8x32xf32>
    %166 = vector.shape_cast %132 : vector<8x1xi1> to vector<8x1xi1>
    %167 = vector.broadcast %166 : vector<8x1xi1> to vector<8x32xi1>
    %168 = arith.select %167, %161, %125 : vector<8x32xi1>, vector<8x32xf32>
    %c16 = arith.constant 16 : index
    %c0_45 = arith.constant 0 : index
    %169 = vector.load %arg10[%c16, %c0_45] : memref<64x32xf32, #tpu.memory_space<vmem>>, vector<8x32xf32>
    tpu.vector_store %arg10[%c16, %c0_45], %165 {strides = array<i32>} : memref<64x32xf32, #tpu.memory_space<vmem>>, vector<8x32xf32>,
    %170 = arith.truncf %165 : vector<8x32xf32> to vector<8x32xbf16>
    %cst_46 = arith.constant dense<0.000000e+00> : vector<8x64xf32>
    %171 = tpu.matmul %170, %41, %cst_46 {dimension_numbers = #tpu.dot_dimension_numbers<[1], [0], [0], [1], [0, 0, 1, 1], [], []>} : vector<8x32xbf16>, vector<32x64xbf16>, vector<8x64xf32> -> vector<8x64xf32>
    %c16_47 = arith.constant 16 : index
    %c0_48 = arith.constant 0 : index
    %172 = vector.load %arg11[%c16_47, %c0_48] : memref<64x64xf32, #tpu.memory_space<vmem>>, vector<8x64xf32>
    tpu.vector_store %arg11[%c16_47, %c0_48], %171 {strides = array<i32>} : memref<64x64xf32, #tpu.memory_space<vmem>>, vector<8x64xf32>,
    %173 = vector.extract_strided_slice %0 {offsets = [24, 1], sizes = [8, 1], strides = [1, 1]} : vector<64x2xf32> to vector<8x1xf32>
    %cst_49 = arith.constant 0.000000e+00 : f32
    %174 = vector.broadcast %cst_49 : f32 to vector<8x1xf32>
    %175 = arith.cmpf ogt, %173, %174 : vector<8x1xf32>
    %176 = vector.extract_strided_slice %39 {offsets = [24, 0], sizes = [8, 128], strides = [1, 1]} : vector<64x128xf32> to vector<8x128xf32>
    %177 = arith.truncf %168 : vector<8x32xf32> to vector<8x32xbf16>
    %cst_50 = arith.constant dense<0.000000e+00> : vector<8x128xf32>
    %178 = tpu.matmul %177, %40, %cst_50 {dimension_numbers = #tpu.dot_dimension_numbers<[1], [0], [0], [1], [0, 0, 1, 1], [], []>} : vector<8x32xbf16>, vector<32x128xbf16>, vector<8x128xf32> -> vector<8x128xf32>
    %179 = arith.addf %176, %178 : vector<8x128xf32>
    %180 = vector.extract_strided_slice %179 {offsets = [0, 0], sizes = [8, 32], strides = [1, 1]} : vector<8x128xf32> to vector<8x32xf32>
    %181 = arith.negf %180 : vector<8x32xf32>
    %182 = math.exp %181 : vector<8x32xf32>
    %cst_51 = arith.constant 1.000000e+00 : f32
    %183 = vector.broadcast %cst_51 : f32 to vector<8x32xf32>
    %184 = arith.addf %183, %182 : vector<8x32xf32>
    %185 = arith.divf %183, %184 : vector<8x32xf32>
    %186 = vector.extract_strided_slice %179 {offsets = [0, 32], sizes = [8, 32], strides = [1, 1]} : vector<8x128xf32> to vector<8x32xf32>
    %187 = arith.negf %186 : vector<8x32xf32>
    %188 = math.exp %187 : vector<8x32xf32>
    %cst_52 = arith.constant 1.000000e+00 : f32
    %189 = vector.broadcast %cst_52 : f32 to vector<8x32xf32>
    %190 = arith.addf %189, %188 : vector<8x32xf32>
    %191 = arith.divf %189, %190 : vector<8x32xf32>
    %192 = vector.extract_strided_slice %179 {offsets = [0, 64], sizes = [8, 32], strides = [1, 1]} : vector<8x128xf32> to vector<8x32xf32>
    %193 = math.tanh %192 : vector<8x32xf32>
    %194 = vector.extract_strided_slice %179 {offsets = [0, 96], sizes = [8, 32], strides = [1, 1]} : vector<8x128xf32> to vector<8x32xf32>
    %195 = arith.negf %194 : vector<8x32xf32>
    %196 = math.exp %195 : vector<8x32xf32>
    %cst_53 = arith.constant 1.000000e+00 : f32
    %197 = vector.broadcast %cst_53 : f32 to vector<8x32xf32>
    %198 = arith.addf %197, %196 : vector<8x32xf32>
    %199 = arith.divf %197, %198 : vector<8x32xf32>
    %200 = arith.mulf %191, %159 : vector<8x32xf32>
    %201 = arith.mulf %185, %193 : vector<8x32xf32>
    %202 = arith.addf %200, %201 : vector<8x32xf32>
    %203 = math.tanh %202 : vector<8x32xf32>
    %204 = arith.mulf %199, %203 : vector<8x32xf32>
    %cst_54 = arith.constant 0.000000e+00 : f32
    %205 = vector.shape_cast %175 : vector<8x1xi1> to vector<8x1xi1>
    %206 = vector.broadcast %205 : vector<8x1xi1> to vector<8x32xi1>
    %207 = vector.broadcast %cst_54 : f32 to vector<8x32xf32>
    %208 = arith.select %206, %204, %207 : vector<8x32xi1>, vector<8x32xf32>
    %209 = vector.shape_cast %175 : vector<8x1xi1> to vector<8x1xi1>
    %210 = vector.broadcast %209 : vector<8x1xi1> to vector<8x32xi1>
    %211 = arith.select %210, %204, %168 : vector<8x32xi1>, vector<8x32xf32>
    %c24 = arith.constant 24 : index
    %c0_55 = arith.constant 0 : index
    %212 = vector.load %arg10[%c24, %c0_55] : memref<64x32xf32, #tpu.memory_space<vmem>>, vector<8x32xf32>
    tpu.vector_store %arg10[%c24, %c0_55], %208 {strides = array<i32>} : memref<64x32xf32, #tpu.memory_space<vmem>>, vector<8x32xf32>,
    %213 = arith.truncf %208 : vector<8x32xf32> to vector<8x32xbf16>
    %cst_56 = arith.constant dense<0.000000e+00> : vector<8x64xf32>
    %214 = tpu.matmul %213, %41, %cst_56 {dimension_numbers = #tpu.dot_dimension_numbers<[1], [0], [0], [1], [0, 0, 1, 1], [], []>} : vector<8x32xbf16>, vector<32x64xbf16>, vector<8x64xf32> -> vector<8x64xf32>
    %c24_57 = arith.constant 24 : index
    %c0_58 = arith.constant 0 : index
    %215 = vector.load %arg11[%c24_57, %c0_58] : memref<64x64xf32, #tpu.memory_space<vmem>>, vector<8x64xf32>
    tpu.vector_store %arg11[%c24_57, %c0_58], %214 {strides = array<i32>} : memref<64x64xf32, #tpu.memory_space<vmem>>, vector<8x64xf32>,
    %216 = vector.extract_strided_slice %0 {offsets = [32, 1], sizes = [8, 1], strides = [1, 1]} : vector<64x2xf32> to vector<8x1xf32>
    %cst_59 = arith.constant 0.000000e+00 : f32
    %217 = vector.broadcast %cst_59 : f32 to vector<8x1xf32>
    %218 = arith.cmpf ogt, %216, %217 : vector<8x1xf32>
    %219 = vector.extract_strided_slice %39 {offsets = [32, 0], sizes = [8, 128], strides = [1, 1]} : vector<64x128xf32> to vector<8x128xf32>
    %220 = arith.truncf %211 : vector<8x32xf32> to vector<8x32xbf16>
    %cst_60 = arith.constant dense<0.000000e+00> : vector<8x128xf32>
    %221 = tpu.matmul %220, %40, %cst_60 {dimension_numbers = #tpu.dot_dimension_numbers<[1], [0], [0], [1], [0, 0, 1, 1], [], []>} : vector<8x32xbf16>, vector<32x128xbf16>, vector<8x128xf32> -> vector<8x128xf32>
    %222 = arith.addf %219, %221 : vector<8x128xf32>
    %223 = vector.extract_strided_slice %222 {offsets = [0, 0], sizes = [8, 32], strides = [1, 1]} : vector<8x128xf32> to vector<8x32xf32>
    %224 = arith.negf %223 : vector<8x32xf32>
    %225 = math.exp %224 : vector<8x32xf32>
    %cst_61 = arith.constant 1.000000e+00 : f32
    %226 = vector.broadcast %cst_61 : f32 to vector<8x32xf32>
    %227 = arith.addf %226, %225 : vector<8x32xf32>
    %228 = arith.divf %226, %227 : vector<8x32xf32>
    %229 = vector.extract_strided_slice %222 {offsets = [0, 32], sizes = [8, 32], strides = [1, 1]} : vector<8x128xf32> to vector<8x32xf32>
    %230 = arith.negf %229 : vector<8x32xf32>
    %231 = math.exp %230 : vector<8x32xf32>
    %cst_62 = arith.constant 1.000000e+00 : f32
    %232 = vector.broadcast %cst_62 : f32 to vector<8x32xf32>
    %233 = arith.addf %232, %231 : vector<8x32xf32>
    %234 = arith.divf %232, %233 : vector<8x32xf32>
    %235 = vector.extract_strided_slice %222 {offsets = [0, 64], sizes = [8, 32], strides = [1, 1]} : vector<8x128xf32> to vector<8x32xf32>
    %236 = math.tanh %235 : vector<8x32xf32>
    %237 = vector.extract_strided_slice %222 {offsets = [0, 96], sizes = [8, 32], strides = [1, 1]} : vector<8x128xf32> to vector<8x32xf32>
    %238 = arith.negf %237 : vector<8x32xf32>
    %239 = math.exp %238 : vector<8x32xf32>
    %cst_63 = arith.constant 1.000000e+00 : f32
    %240 = vector.broadcast %cst_63 : f32 to vector<8x32xf32>
    %241 = arith.addf %240, %239 : vector<8x32xf32>
    %242 = arith.divf %240, %241 : vector<8x32xf32>
    %243 = arith.mulf %234, %202 : vector<8x32xf32>
    %244 = arith.mulf %228, %236 : vector<8x32xf32>
    %245 = arith.addf %243, %244 : vector<8x32xf32>
    %246 = math.tanh %245 : vector<8x32xf32>
    %247 = arith.mulf %242, %246 : vector<8x32xf32>
    %cst_64 = arith.constant 0.000000e+00 : f32
    %248 = vector.shape_cast %218 : vector<8x1xi1> to vector<8x1xi1>
    %249 = vector.broadcast %248 : vector<8x1xi1> to vector<8x32xi1>
    %250 = vector.broadcast %cst_64 : f32 to vector<8x32xf32>
    %251 = arith.select %249, %247, %250 : vector<8x32xi1>, vector<8x32xf32>
    %252 = vector.shape_cast %218 : vector<8x1xi1> to vector<8x1xi1>
    %253 = vector.broadcast %252 : vector<8x1xi1> to vector<8x32xi1>
    %254 = arith.select %253, %247, %211 : vector<8x32xi1>, vector<8x32xf32>
    %c32 = arith.constant 32 : index
    %c0_65 = arith.constant 0 : index
    %255 = vector.load %arg10[%c32, %c0_65] : memref<64x32xf32, #tpu.memory_space<vmem>>, vector<8x32xf32>
    tpu.vector_store %arg10[%c32, %c0_65], %251 {strides = array<i32>} : memref<64x32xf32, #tpu.memory_space<vmem>>, vector<8x32xf32>,
    %256 = arith.truncf %251 : vector<8x32xf32> to vector<8x32xbf16>
    %cst_66 = arith.constant dense<0.000000e+00> : vector<8x64xf32>
    %257 = tpu.matmul %256, %41, %cst_66 {dimension_numbers = #tpu.dot_dimension_numbers<[1], [0], [0], [1], [0, 0, 1, 1], [], []>} : vector<8x32xbf16>, vector<32x64xbf16>, vector<8x64xf32> -> vector<8x64xf32>
    %c32_67 = arith.constant 32 : index
    %c0_68 = arith.constant 0 : index
    %258 = vector.load %arg11[%c32_67, %c0_68] : memref<64x64xf32, #tpu.memory_space<vmem>>, vector<8x64xf32>
    tpu.vector_store %arg11[%c32_67, %c0_68], %257 {strides = array<i32>} : memref<64x64xf32, #tpu.memory_space<vmem>>, vector<8x64xf32>,
    %259 = vector.extract_strided_slice %0 {offsets = [40, 1], sizes = [8, 1], strides = [1, 1]} : vector<64x2xf32> to vector<8x1xf32>
    %cst_69 = arith.constant 0.000000e+00 : f32
    %260 = vector.broadcast %cst_69 : f32 to vector<8x1xf32>
    %261 = arith.cmpf ogt, %259, %260 : vector<8x1xf32>
    %262 = vector.extract_strided_slice %39 {offsets = [40, 0], sizes = [8, 128], strides = [1, 1]} : vector<64x128xf32> to vector<8x128xf32>
    %263 = arith.truncf %254 : vector<8x32xf32> to vector<8x32xbf16>
    %cst_70 = arith.constant dense<0.000000e+00> : vector<8x128xf32>
    %264 = tpu.matmul %263, %40, %cst_70 {dimension_numbers = #tpu.dot_dimension_numbers<[1], [0], [0], [1], [0, 0, 1, 1], [], []>} : vector<8x32xbf16>, vector<32x128xbf16>, vector<8x128xf32> -> vector<8x128xf32>
    %265 = arith.addf %262, %264 : vector<8x128xf32>
    %266 = vector.extract_strided_slice %265 {offsets = [0, 0], sizes = [8, 32], strides = [1, 1]} : vector<8x128xf32> to vector<8x32xf32>
    %267 = arith.negf %266 : vector<8x32xf32>
    %268 = math.exp %267 : vector<8x32xf32>
    %cst_71 = arith.constant 1.000000e+00 : f32
    %269 = vector.broadcast %cst_71 : f32 to vector<8x32xf32>
    %270 = arith.addf %269, %268 : vector<8x32xf32>
    %271 = arith.divf %269, %270 : vector<8x32xf32>
    %272 = vector.extract_strided_slice %265 {offsets = [0, 32], sizes = [8, 32], strides = [1, 1]} : vector<8x128xf32> to vector<8x32xf32>
    %273 = arith.negf %272 : vector<8x32xf32>
    %274 = math.exp %273 : vector<8x32xf32>
    %cst_72 = arith.constant 1.000000e+00 : f32
    %275 = vector.broadcast %cst_72 : f32 to vector<8x32xf32>
    %276 = arith.addf %275, %274 : vector<8x32xf32>
    %277 = arith.divf %275, %276 : vector<8x32xf32>
    %278 = vector.extract_strided_slice %265 {offsets = [0, 64], sizes = [8, 32], strides = [1, 1]} : vector<8x128xf32> to vector<8x32xf32>
    %279 = math.tanh %278 : vector<8x32xf32>
    %280 = vector.extract_strided_slice %265 {offsets = [0, 96], sizes = [8, 32], strides = [1, 1]} : vector<8x128xf32> to vector<8x32xf32>
    %281 = arith.negf %280 : vector<8x32xf32>
    %282 = math.exp %281 : vector<8x32xf32>
    %cst_73 = arith.constant 1.000000e+00 : f32
    %283 = vector.broadcast %cst_73 : f32 to vector<8x32xf32>
    %284 = arith.addf %283, %282 : vector<8x32xf32>
    %285 = arith.divf %283, %284 : vector<8x32xf32>
    %286 = arith.mulf %277, %245 : vector<8x32xf32>
    %287 = arith.mulf %271, %279 : vector<8x32xf32>
    %288 = arith.addf %286, %287 : vector<8x32xf32>
    %289 = math.tanh %288 : vector<8x32xf32>
    %290 = arith.mulf %285, %289 : vector<8x32xf32>
    %cst_74 = arith.constant 0.000000e+00 : f32
    %291 = vector.shape_cast %261 : vector<8x1xi1> to vector<8x1xi1>
    %292 = vector.broadcast %291 : vector<8x1xi1> to vector<8x32xi1>
    %293 = vector.broadcast %cst_74 : f32 to vector<8x32xf32>
    %294 = arith.select %292, %290, %293 : vector<8x32xi1>, vector<8x32xf32>
    %295 = vector.shape_cast %261 : vector<8x1xi1> to vector<8x1xi1>
    %296 = vector.broadcast %295 : vector<8x1xi1> to vector<8x32xi1>
    %297 = arith.select %296, %290, %254 : vector<8x32xi1>, vector<8x32xf32>
    %c40 = arith.constant 40 : index
    %c0_75 = arith.constant 0 : index
    %298 = vector.load %arg10[%c40, %c0_75] : memref<64x32xf32, #tpu.memory_space<vmem>>, vector<8x32xf32>
    tpu.vector_store %arg10[%c40, %c0_75], %294 {strides = array<i32>} : memref<64x32xf32, #tpu.memory_space<vmem>>, vector<8x32xf32>,
    %299 = arith.truncf %294 : vector<8x32xf32> to vector<8x32xbf16>
    %cst_76 = arith.constant dense<0.000000e+00> : vector<8x64xf32>
    %300 = tpu.matmul %299, %41, %cst_76 {dimension_numbers = #tpu.dot_dimension_numbers<[1], [0], [0], [1], [0, 0, 1, 1], [], []>} : vector<8x32xbf16>, vector<32x64xbf16>, vector<8x64xf32> -> vector<8x64xf32>
    %c40_77 = arith.constant 40 : index
    %c0_78 = arith.constant 0 : index
    %301 = vector.load %arg11[%c40_77, %c0_78] : memref<64x64xf32, #tpu.memory_space<vmem>>, vector<8x64xf32>
    tpu.vector_store %arg11[%c40_77, %c0_78], %300 {strides = array<i32>} : memref<64x64xf32, #tpu.memory_space<vmem>>, vector<8x64xf32>,
    %302 = vector.extract_strided_slice %0 {offsets = [48, 1], sizes = [8, 1], strides = [1, 1]} : vector<64x2xf32> to vector<8x1xf32>
    %cst_79 = arith.constant 0.000000e+00 : f32
    %303 = vector.broadcast %cst_79 : f32 to vector<8x1xf32>
    %304 = arith.cmpf ogt, %302, %303 : vector<8x1xf32>
    %305 = vector.extract_strided_slice %39 {offsets = [48, 0], sizes = [8, 128], strides = [1, 1]} : vector<64x128xf32> to vector<8x128xf32>
    %306 = arith.truncf %297 : vector<8x32xf32> to vector<8x32xbf16>
    %cst_80 = arith.constant dense<0.000000e+00> : vector<8x128xf32>
    %307 = tpu.matmul %306, %40, %cst_80 {dimension_numbers = #tpu.dot_dimension_numbers<[1], [0], [0], [1], [0, 0, 1, 1], [], []>} : vector<8x32xbf16>, vector<32x128xbf16>, vector<8x128xf32> -> vector<8x128xf32>
    %308 = arith.addf %305, %307 : vector<8x128xf32>
    %309 = vector.extract_strided_slice %308 {offsets = [0, 0], sizes = [8, 32], strides = [1, 1]} : vector<8x128xf32> to vector<8x32xf32>
    %310 = arith.negf %309 : vector<8x32xf32>
    %311 = math.exp %310 : vector<8x32xf32>
    %cst_81 = arith.constant 1.000000e+00 : f32
    %312 = vector.broadcast %cst_81 : f32 to vector<8x32xf32>
    %313 = arith.addf %312, %311 : vector<8x32xf32>
    %314 = arith.divf %312, %313 : vector<8x32xf32>
    %315 = vector.extract_strided_slice %308 {offsets = [0, 32], sizes = [8, 32], strides = [1, 1]} : vector<8x128xf32> to vector<8x32xf32>
    %316 = arith.negf %315 : vector<8x32xf32>
    %317 = math.exp %316 : vector<8x32xf32>
    %cst_82 = arith.constant 1.000000e+00 : f32
    %318 = vector.broadcast %cst_82 : f32 to vector<8x32xf32>
    %319 = arith.addf %318, %317 : vector<8x32xf32>
    %320 = arith.divf %318, %319 : vector<8x32xf32>
    %321 = vector.extract_strided_slice %308 {offsets = [0, 64], sizes = [8, 32], strides = [1, 1]} : vector<8x128xf32> to vector<8x32xf32>
    %322 = math.tanh %321 : vector<8x32xf32>
    %323 = vector.extract_strided_slice %308 {offsets = [0, 96], sizes = [8, 32], strides = [1, 1]} : vector<8x128xf32> to vector<8x32xf32>
    %324 = arith.negf %323 : vector<8x32xf32>
    %325 = math.exp %324 : vector<8x32xf32>
    %cst_83 = arith.constant 1.000000e+00 : f32
    %326 = vector.broadcast %cst_83 : f32 to vector<8x32xf32>
    %327 = arith.addf %326, %325 : vector<8x32xf32>
    %328 = arith.divf %326, %327 : vector<8x32xf32>
    %329 = arith.mulf %320, %288 : vector<8x32xf32>
    %330 = arith.mulf %314, %322 : vector<8x32xf32>
    %331 = arith.addf %329, %330 : vector<8x32xf32>
    %332 = math.tanh %331 : vector<8x32xf32>
    %333 = arith.mulf %328, %332 : vector<8x32xf32>
    %cst_84 = arith.constant 0.000000e+00 : f32
    %334 = vector.shape_cast %304 : vector<8x1xi1> to vector<8x1xi1>
    %335 = vector.broadcast %334 : vector<8x1xi1> to vector<8x32xi1>
    %336 = vector.broadcast %cst_84 : f32 to vector<8x32xf32>
    %337 = arith.select %335, %333, %336 : vector<8x32xi1>, vector<8x32xf32>
    %338 = vector.shape_cast %304 : vector<8x1xi1> to vector<8x1xi1>
    %339 = vector.broadcast %338 : vector<8x1xi1> to vector<8x32xi1>
    %340 = arith.select %339, %333, %297 : vector<8x32xi1>, vector<8x32xf32>
    %c48 = arith.constant 48 : index
    %c0_85 = arith.constant 0 : index
    %341 = vector.load %arg10[%c48, %c0_85] : memref<64x32xf32, #tpu.memory_space<vmem>>, vector<8x32xf32>
    tpu.vector_store %arg10[%c48, %c0_85], %337 {strides = array<i32>} : memref<64x32xf32, #tpu.memory_space<vmem>>, vector<8x32xf32>,
    %342 = arith.truncf %337 : vector<8x32xf32> to vector<8x32xbf16>
    %cst_86 = arith.constant dense<0.000000e+00> : vector<8x64xf32>
    %343 = tpu.matmul %342, %41, %cst_86 {dimension_numbers = #tpu.dot_dimension_numbers<[1], [0], [0], [1], [0, 0, 1, 1], [], []>} : vector<8x32xbf16>, vector<32x64xbf16>, vector<8x64xf32> -> vector<8x64xf32>
    %c48_87 = arith.constant 48 : index
    %c0_88 = arith.constant 0 : index
    %344 = vector.load %arg11[%c48_87, %c0_88] : memref<64x64xf32, #tpu.memory_space<vmem>>, vector<8x64xf32>
    tpu.vector_store %arg11[%c48_87, %c0_88], %343 {strides = array<i32>} : memref<64x64xf32, #tpu.memory_space<vmem>>, vector<8x64xf32>,
    %345 = vector.extract_strided_slice %0 {offsets = [56, 1], sizes = [8, 1], strides = [1, 1]} : vector<64x2xf32> to vector<8x1xf32>
    %cst_89 = arith.constant 0.000000e+00 : f32
    %346 = vector.broadcast %cst_89 : f32 to vector<8x1xf32>
    %347 = arith.cmpf ogt, %345, %346 : vector<8x1xf32>
    %348 = vector.extract_strided_slice %39 {offsets = [56, 0], sizes = [8, 128], strides = [1, 1]} : vector<64x128xf32> to vector<8x128xf32>
    %349 = arith.truncf %340 : vector<8x32xf32> to vector<8x32xbf16>
    %cst_90 = arith.constant dense<0.000000e+00> : vector<8x128xf32>
    %350 = tpu.matmul %349, %40, %cst_90 {dimension_numbers = #tpu.dot_dimension_numbers<[1], [0], [0], [1], [0, 0, 1, 1], [], []>} : vector<8x32xbf16>, vector<32x128xbf16>, vector<8x128xf32> -> vector<8x128xf32>
    %351 = arith.addf %348, %350 : vector<8x128xf32>
    %352 = vector.extract_strided_slice %351 {offsets = [0, 0], sizes = [8, 32], strides = [1, 1]} : vector<8x128xf32> to vector<8x32xf32>
    %353 = arith.negf %352 : vector<8x32xf32>
    %354 = math.exp %353 : vector<8x32xf32>
    %cst_91 = arith.constant 1.000000e+00 : f32
    %355 = vector.broadcast %cst_91 : f32 to vector<8x32xf32>
    %356 = arith.addf %355, %354 : vector<8x32xf32>
    %357 = arith.divf %355, %356 : vector<8x32xf32>
    %358 = vector.extract_strided_slice %351 {offsets = [0, 32], sizes = [8, 32], strides = [1, 1]} : vector<8x128xf32> to vector<8x32xf32>
    %359 = arith.negf %358 : vector<8x32xf32>
    %360 = math.exp %359 : vector<8x32xf32>
    %cst_92 = arith.constant 1.000000e+00 : f32
    %361 = vector.broadcast %cst_92 : f32 to vector<8x32xf32>
    %362 = arith.addf %361, %360 : vector<8x32xf32>
    %363 = arith.divf %361, %362 : vector<8x32xf32>
    %364 = vector.extract_strided_slice %351 {offsets = [0, 64], sizes = [8, 32], strides = [1, 1]} : vector<8x128xf32> to vector<8x32xf32>
    %365 = math.tanh %364 : vector<8x32xf32>
    %366 = vector.extract_strided_slice %351 {offsets = [0, 96], sizes = [8, 32], strides = [1, 1]} : vector<8x128xf32> to vector<8x32xf32>
    %367 = arith.negf %366 : vector<8x32xf32>
    %368 = math.exp %367 : vector<8x32xf32>
    %cst_93 = arith.constant 1.000000e+00 : f32
    %369 = vector.broadcast %cst_93 : f32 to vector<8x32xf32>
    %370 = arith.addf %369, %368 : vector<8x32xf32>
    %371 = arith.divf %369, %370 : vector<8x32xf32>
    %372 = arith.mulf %363, %331 : vector<8x32xf32>
    %373 = arith.mulf %357, %365 : vector<8x32xf32>
    %374 = arith.addf %372, %373 : vector<8x32xf32>
    %375 = math.tanh %374 : vector<8x32xf32>
    %376 = arith.mulf %371, %375 : vector<8x32xf32>
    %cst_94 = arith.constant 0.000000e+00 : f32
    %377 = vector.shape_cast %347 : vector<8x1xi1> to vector<8x1xi1>
    %378 = vector.broadcast %377 : vector<8x1xi1> to vector<8x32xi1>
    %379 = vector.broadcast %cst_94 : f32 to vector<8x32xf32>
    %380 = arith.select %378, %376, %379 : vector<8x32xi1>, vector<8x32xf32>
    %381 = vector.shape_cast %347 : vector<8x1xi1> to vector<8x1xi1>
    %382 = vector.broadcast %381 : vector<8x1xi1> to vector<8x32xi1>
    %383 = arith.select %382, %376, %340 : vector<8x32xi1>, vector<8x32xf32>
    %c56 = arith.constant 56 : index
    %c0_95 = arith.constant 0 : index
    %384 = vector.load %arg10[%c56, %c0_95] : memref<64x32xf32, #tpu.memory_space<vmem>>, vector<8x32xf32>
    tpu.vector_store %arg10[%c56, %c0_95], %380 {strides = array<i32>} : memref<64x32xf32, #tpu.memory_space<vmem>>, vector<8x32xf32>,
    %385 = arith.truncf %380 : vector<8x32xf32> to vector<8x32xbf16>
    %cst_96 = arith.constant dense<0.000000e+00> : vector<8x64xf32>
    %386 = tpu.matmul %385, %41, %cst_96 {dimension_numbers = #tpu.dot_dimension_numbers<[1], [0], [0], [1], [0, 0, 1, 1], [], []>} : vector<8x32xbf16>, vector<32x64xbf16>, vector<8x64xf32> -> vector<8x64xf32>
    %c56_97 = arith.constant 56 : index
    %c0_98 = arith.constant 0 : index
    %387 = vector.load %arg11[%c56_97, %c0_98] : memref<64x64xf32, #tpu.memory_space<vmem>>, vector<8x64xf32>
    tpu.vector_store %arg11[%c56_97, %c0_98], %386 {strides = array<i32>} : memref<64x64xf32, #tpu.memory_space<vmem>>, vector<8x64xf32>,
    %c0_99 = arith.constant 0 : index
    %c0_100 = arith.constant 0 : index
    %388 = vector.load %arg6[%c0_99, %c0_100] : memref<32x64xbf16, #tpu.memory_space<vmem>>, vector<32x64xbf16>
    %c0_101 = arith.constant 0 : index
    %c0_102 = arith.constant 0 : index
    %389 = vector.load %arg7[%c0_101, %c0_102] : memref<32x2xbf16, #tpu.memory_space<vmem>>, vector<32x2xbf16>
    %c8_103 = arith.constant 8 : index
    %390 = memref.load %arg8[%c8_103] : memref<11xf32, #tpu.memory_space<smem>>
    %391 = arith.truncf %383 : vector<8x32xf32> to vector<8x32xbf16>
    %392 = vector.extract_strided_slice %388 {offsets = [0, 0], sizes = [32, 32], strides = [1, 1]} : vector<32x64xbf16> to vector<32x32xbf16>
    %cst_104 = arith.constant dense<0.000000e+00> : vector<8x32xf32>
    %393 = tpu.matmul %391, %392, %cst_104 {dimension_numbers = #tpu.dot_dimension_numbers<[1], [0], [0], [1], [0, 0, 1, 1], [], []>} : vector<8x32xbf16>, vector<32x32xbf16>, vector<8x32xf32> -> vector<8x32xf32>
    %c0_105 = arith.constant 0 : index
    %c0_106 = arith.constant 0 : index
    %394 = vector.load %arg11[%c0_105, %c0_106] : memref<64x64xf32, #tpu.memory_space<vmem>>, vector<8x32xf32>
    %395 = arith.addf %394, %393 : vector<8x32xf32>
    %396 = math.tanh %395 : vector<8x32xf32>
    %397 = arith.truncf %396 : vector<8x32xf32> to vector<8x32xbf16>
    %cst_107 = arith.constant dense<0.000000e+00> : vector<8x2xf32>
    %398 = tpu.matmul %397, %389, %cst_107 {dimension_numbers = #tpu.dot_dimension_numbers<[1], [0], [0], [1], [0, 0, 1, 1], [], []>} : vector<8x32xbf16>, vector<32x2xbf16>, vector<8x2xf32> -> vector<8x2xf32>
    %399 = vector.extract_strided_slice %398 {offsets = [0, 0], sizes = [8, 1], strides = [1, 1]} : vector<8x2xf32> to vector<8x1xf32>
    %400 = vector.broadcast %390 : f32 to vector<8x1xf32>
    %401 = arith.addf %399, %400 : vector<8x1xf32>
    %c0_108 = arith.constant 0 : index
    %c0_109 = arith.constant 0 : index
    %402 = vector.load %arg10[%c0_108, %c0_109] : memref<64x32xf32, #tpu.memory_space<vmem>>, vector<8x32xf32>
    %403 = vector.broadcast %401 : vector<8x1xf32> to vector<8x32xf32>
    %404 = arith.mulf %403, %402 : vector<8x32xf32>
    %405 = arith.addf %383, %404 : vector<8x32xf32>
    %c8_110 = arith.constant 8 : index
    %c0_111 = arith.constant 0 : index
    %406 = vector.load %arg11[%c8_110, %c0_111] : memref<64x64xf32, #tpu.memory_space<vmem>>, vector<8x32xf32>
    %407 = arith.addf %406, %393 : vector<8x32xf32>
    %408 = math.tanh %407 : vector<8x32xf32>
    %409 = arith.truncf %408 : vector<8x32xf32> to vector<8x32xbf16>
    %cst_112 = arith.constant dense<0.000000e+00> : vector<8x2xf32>
    %410 = tpu.matmul %409, %389, %cst_112 {dimension_numbers = #tpu.dot_dimension_numbers<[1], [0], [0], [1], [0, 0, 1, 1], [], []>} : vector<8x32xbf16>, vector<32x2xbf16>, vector<8x2xf32> -> vector<8x2xf32>
    %411 = vector.extract_strided_slice %410 {offsets = [0, 0], sizes = [8, 1], strides = [1, 1]} : vector<8x2xf32> to vector<8x1xf32>
    %412 = vector.broadcast %390 : f32 to vector<8x1xf32>
    %413 = arith.addf %411, %412 : vector<8x1xf32>
    %c8_113 = arith.constant 8 : index
    %c0_114 = arith.constant 0 : index
    %414 = vector.load %arg10[%c8_113, %c0_114] : memref<64x32xf32, #tpu.memory_space<vmem>>, vector<8x32xf32>
    %415 = vector.broadcast %413 : vector<8x1xf32> to vector<8x32xf32>
    %416 = arith.mulf %415, %414 : vector<8x32xf32>
    %417 = arith.addf %405, %416 : vector<8x32xf32>
    %c16_115 = arith.constant 16 : index
    %c0_116 = arith.constant 0 : index
    %418 = vector.load %arg11[%c16_115, %c0_116] : memref<64x64xf32, #tpu.memory_space<vmem>>, vector<8x32xf32>
    %419 = arith.addf %418, %393 : vector<8x32xf32>
    %420 = math.tanh %419 : vector<8x32xf32>
    %421 = arith.truncf %420 : vector<8x32xf32> to vector<8x32xbf16>
    %cst_117 = arith.constant dense<0.000000e+00> : vector<8x2xf32>
    %422 = tpu.matmul %421, %389, %cst_117 {dimension_numbers = #tpu.dot_dimension_numbers<[1], [0], [0], [1], [0, 0, 1, 1], [], []>} : vector<8x32xbf16>, vector<32x2xbf16>, vector<8x2xf32> -> vector<8x2xf32>
    %423 = vector.extract_strided_slice %422 {offsets = [0, 0], sizes = [8, 1], strides = [1, 1]} : vector<8x2xf32> to vector<8x1xf32>
    %424 = vector.broadcast %390 : f32 to vector<8x1xf32>
    %425 = arith.addf %423, %424 : vector<8x1xf32>
    %c16_118 = arith.constant 16 : index
    %c0_119 = arith.constant 0 : index
    %426 = vector.load %arg10[%c16_118, %c0_119] : memref<64x32xf32, #tpu.memory_space<vmem>>, vector<8x32xf32>
    %427 = vector.broadcast %425 : vector<8x1xf32> to vector<8x32xf32>
    %428 = arith.mulf %427, %426 : vector<8x32xf32>
    %429 = arith.addf %417, %428 : vector<8x32xf32>
    %c24_120 = arith.constant 24 : index
    %c0_121 = arith.constant 0 : index
    %430 = vector.load %arg11[%c24_120, %c0_121] : memref<64x64xf32, #tpu.memory_space<vmem>>, vector<8x32xf32>
    %431 = arith.addf %430, %393 : vector<8x32xf32>
    %432 = math.tanh %431 : vector<8x32xf32>
    %433 = arith.truncf %432 : vector<8x32xf32> to vector<8x32xbf16>
    %cst_122 = arith.constant dense<0.000000e+00> : vector<8x2xf32>
    %434 = tpu.matmul %433, %389, %cst_122 {dimension_numbers = #tpu.dot_dimension_numbers<[1], [0], [0], [1], [0, 0, 1, 1], [], []>} : vector<8x32xbf16>, vector<32x2xbf16>, vector<8x2xf32> -> vector<8x2xf32>
    %435 = vector.extract_strided_slice %434 {offsets = [0, 0], sizes = [8, 1], strides = [1, 1]} : vector<8x2xf32> to vector<8x1xf32>
    %436 = vector.broadcast %390 : f32 to vector<8x1xf32>
    %437 = arith.addf %435, %436 : vector<8x1xf32>
    %c24_123 = arith.constant 24 : index
    %c0_124 = arith.constant 0 : index
    %438 = vector.load %arg10[%c24_123, %c0_124] : memref<64x32xf32, #tpu.memory_space<vmem>>, vector<8x32xf32>
    %439 = vector.broadcast %437 : vector<8x1xf32> to vector<8x32xf32>
    %440 = arith.mulf %439, %438 : vector<8x32xf32>
    %441 = arith.addf %429, %440 : vector<8x32xf32>
    %c32_125 = arith.constant 32 : index
    %c0_126 = arith.constant 0 : index
    %442 = vector.load %arg11[%c32_125, %c0_126] : memref<64x64xf32, #tpu.memory_space<vmem>>, vector<8x32xf32>
    %443 = arith.addf %442, %393 : vector<8x32xf32>
    %444 = math.tanh %443 : vector<8x32xf32>
    %445 = arith.truncf %444 : vector<8x32xf32> to vector<8x32xbf16>
    %cst_127 = arith.constant dense<0.000000e+00> : vector<8x2xf32>
    %446 = tpu.matmul %445, %389, %cst_127 {dimension_numbers = #tpu.dot_dimension_numbers<[1], [0], [0], [1], [0, 0, 1, 1], [], []>} : vector<8x32xbf16>, vector<32x2xbf16>, vector<8x2xf32> -> vector<8x2xf32>
    %447 = vector.extract_strided_slice %446 {offsets = [0, 0], sizes = [8, 1], strides = [1, 1]} : vector<8x2xf32> to vector<8x1xf32>
    %448 = vector.broadcast %390 : f32 to vector<8x1xf32>
    %449 = arith.addf %447, %448 : vector<8x1xf32>
    %c32_128 = arith.constant 32 : index
    %c0_129 = arith.constant 0 : index
    %450 = vector.load %arg10[%c32_128, %c0_129] : memref<64x32xf32, #tpu.memory_space<vmem>>, vector<8x32xf32>
    %451 = vector.broadcast %449 : vector<8x1xf32> to vector<8x32xf32>
    %452 = arith.mulf %451, %450 : vector<8x32xf32>
    %453 = arith.addf %441, %452 : vector<8x32xf32>
    %c40_130 = arith.constant 40 : index
    %c0_131 = arith.constant 0 : index
    %454 = vector.load %arg11[%c40_130, %c0_131] : memref<64x64xf32, #tpu.memory_space<vmem>>, vector<8x32xf32>
    %455 = arith.addf %454, %393 : vector<8x32xf32>
    %456 = math.tanh %455 : vector<8x32xf32>
    %457 = arith.truncf %456 : vector<8x32xf32> to vector<8x32xbf16>
    %cst_132 = arith.constant dense<0.000000e+00> : vector<8x2xf32>
    %458 = tpu.matmul %457, %389, %cst_132 {dimension_numbers = #tpu.dot_dimension_numbers<[1], [0], [0], [1], [0, 0, 1, 1], [], []>} : vector<8x32xbf16>, vector<32x2xbf16>, vector<8x2xf32> -> vector<8x2xf32>
    %459 = vector.extract_strided_slice %458 {offsets = [0, 0], sizes = [8, 1], strides = [1, 1]} : vector<8x2xf32> to vector<8x1xf32>
    %460 = vector.broadcast %390 : f32 to vector<8x1xf32>
    %461 = arith.addf %459, %460 : vector<8x1xf32>
    %c40_133 = arith.constant 40 : index
    %c0_134 = arith.constant 0 : index
    %462 = vector.load %arg10[%c40_133, %c0_134] : memref<64x32xf32, #tpu.memory_space<vmem>>, vector<8x32xf32>
    %463 = vector.broadcast %461 : vector<8x1xf32> to vector<8x32xf32>
    %464 = arith.mulf %463, %462 : vector<8x32xf32>
    %465 = arith.addf %453, %464 : vector<8x32xf32>
    %c48_135 = arith.constant 48 : index
    %c0_136 = arith.constant 0 : index
    %466 = vector.load %arg11[%c48_135, %c0_136] : memref<64x64xf32, #tpu.memory_space<vmem>>, vector<8x32xf32>
    %467 = arith.addf %466, %393 : vector<8x32xf32>
    %468 = math.tanh %467 : vector<8x32xf32>
    %469 = arith.truncf %468 : vector<8x32xf32> to vector<8x32xbf16>
    %cst_137 = arith.constant dense<0.000000e+00> : vector<8x2xf32>
    %470 = tpu.matmul %469, %389, %cst_137 {dimension_numbers = #tpu.dot_dimension_numbers<[1], [0], [0], [1], [0, 0, 1, 1], [], []>} : vector<8x32xbf16>, vector<32x2xbf16>, vector<8x2xf32> -> vector<8x2xf32>
    %471 = vector.extract_strided_slice %470 {offsets = [0, 0], sizes = [8, 1], strides = [1, 1]} : vector<8x2xf32> to vector<8x1xf32>
    %472 = vector.broadcast %390 : f32 to vector<8x1xf32>
    %473 = arith.addf %471, %472 : vector<8x1xf32>
    %c48_138 = arith.constant 48 : index
    %c0_139 = arith.constant 0 : index
    %474 = vector.load %arg10[%c48_138, %c0_139] : memref<64x32xf32, #tpu.memory_space<vmem>>, vector<8x32xf32>
    %475 = vector.broadcast %473 : vector<8x1xf32> to vector<8x32xf32>
    %476 = arith.mulf %475, %474 : vector<8x32xf32>
    %477 = arith.addf %465, %476 : vector<8x32xf32>
    %c56_140 = arith.constant 56 : index
    %c0_141 = arith.constant 0 : index
    %478 = vector.load %arg11[%c56_140, %c0_141] : memref<64x64xf32, #tpu.memory_space<vmem>>, vector<8x32xf32>
    %479 = arith.addf %478, %393 : vector<8x32xf32>
    %480 = math.tanh %479 : vector<8x32xf32>
    %481 = arith.truncf %480 : vector<8x32xf32> to vector<8x32xbf16>
    %cst_142 = arith.constant dense<0.000000e+00> : vector<8x2xf32>
    %482 = tpu.matmul %481, %389, %cst_142 {dimension_numbers = #tpu.dot_dimension_numbers<[1], [0], [0], [1], [0, 0, 1, 1], [], []>} : vector<8x32xbf16>, vector<32x2xbf16>, vector<8x2xf32> -> vector<8x2xf32>
    %483 = vector.extract_strided_slice %482 {offsets = [0, 0], sizes = [8, 1], strides = [1, 1]} : vector<8x2xf32> to vector<8x1xf32>
    %484 = vector.broadcast %390 : f32 to vector<8x1xf32>
    %485 = arith.addf %483, %484 : vector<8x1xf32>
    %c56_143 = arith.constant 56 : index
    %c0_144 = arith.constant 0 : index
    %486 = vector.load %arg10[%c56_143, %c0_144] : memref<64x32xf32, #tpu.memory_space<vmem>>, vector<8x32xf32>
    %487 = vector.broadcast %485 : vector<8x1xf32> to vector<8x32xf32>
    %488 = arith.mulf %487, %486 : vector<8x32xf32>
    %489 = arith.addf %477, %488 : vector<8x32xf32>
    %c9 = arith.constant 9 : index
    %490 = memref.load %arg8[%c9] : memref<11xf32, #tpu.memory_space<smem>>
    %491 = arith.truncf %489 : vector<8x32xf32> to vector<8x32xbf16>
    %492 = vector.extract_strided_slice %388 {offsets = [0, 32], sizes = [32, 32], strides = [1, 1]} : vector<32x64xbf16> to vector<32x32xbf16>
    %cst_145 = arith.constant dense<0.000000e+00> : vector<8x32xf32>
    %493 = tpu.matmul %491, %492, %cst_145 {dimension_numbers = #tpu.dot_dimension_numbers<[1], [0], [0], [1], [0, 0, 1, 1], [], []>} : vector<8x32xbf16>, vector<32x32xbf16>, vector<8x32xf32> -> vector<8x32xf32>
    %cst_146 = arith.constant 0.000000e+00 : f32
    %494 = vector.broadcast %cst_146 : f32 to vector<8x1xf32>
    %c0_147 = arith.constant 0 : index
    %c32_148 = arith.constant 32 : index
    %495 = vector.load %arg11[%c0_147, %c32_148] : memref<64x64xf32, #tpu.memory_space<vmem>>, vector<8x32xf32>
    %496 = arith.addf %495, %493 : vector<8x32xf32>
    %497 = math.tanh %496 : vector<8x32xf32>
    %498 = arith.truncf %497 : vector<8x32xf32> to vector<8x32xbf16>
    %cst_149 = arith.constant dense<0.000000e+00> : vector<8x2xf32>
    %499 = tpu.matmul %498, %389, %cst_149 {dimension_numbers = #tpu.dot_dimension_numbers<[1], [0], [0], [1], [0, 0, 1, 1], [], []>} : vector<8x32xbf16>, vector<32x2xbf16>, vector<8x2xf32> -> vector<8x2xf32>
    %500 = vector.extract_strided_slice %499 {offsets = [0, 1], sizes = [8, 1], strides = [1, 1]} : vector<8x2xf32> to vector<8x1xf32>
    %501 = vector.broadcast %490 : f32 to vector<8x1xf32>
    %502 = arith.addf %500, %501 : vector<8x1xf32>
    %503 = vector.extract_strided_slice %0 {offsets = [0, 1], sizes = [8, 1], strides = [1, 1]} : vector<64x2xf32> to vector<8x1xf32>
    %504 = arith.mulf %502, %503 : vector<8x1xf32>
    %c0_150 = arith.constant 0 : index
    %505 = memref.load %arg8[%c0_150] : memref<11xf32, #tpu.memory_space<smem>>
    %506 = vector.broadcast %505 : f32 to vector<8x1xf32>
    %507 = arith.mulf %506, %504 : vector<8x1xf32>
    %508 = arith.addf %494, %507 : vector<8x1xf32>
    %c8_151 = arith.constant 8 : index
    %c32_152 = arith.constant 32 : index
    %509 = vector.load %arg11[%c8_151, %c32_152] : memref<64x64xf32, #tpu.memory_space<vmem>>, vector<8x32xf32>
    %510 = arith.addf %509, %493 : vector<8x32xf32>
    %511 = math.tanh %510 : vector<8x32xf32>
    %512 = arith.truncf %511 : vector<8x32xf32> to vector<8x32xbf16>
    %cst_153 = arith.constant dense<0.000000e+00> : vector<8x2xf32>
    %513 = tpu.matmul %512, %389, %cst_153 {dimension_numbers = #tpu.dot_dimension_numbers<[1], [0], [0], [1], [0, 0, 1, 1], [], []>} : vector<8x32xbf16>, vector<32x2xbf16>, vector<8x2xf32> -> vector<8x2xf32>
    %514 = vector.extract_strided_slice %513 {offsets = [0, 1], sizes = [8, 1], strides = [1, 1]} : vector<8x2xf32> to vector<8x1xf32>
    %515 = vector.broadcast %490 : f32 to vector<8x1xf32>
    %516 = arith.addf %514, %515 : vector<8x1xf32>
    %517 = vector.extract_strided_slice %0 {offsets = [8, 1], sizes = [8, 1], strides = [1, 1]} : vector<64x2xf32> to vector<8x1xf32>
    %518 = arith.mulf %516, %517 : vector<8x1xf32>
    %c1 = arith.constant 1 : index
    %519 = memref.load %arg8[%c1] : memref<11xf32, #tpu.memory_space<smem>>
    %520 = vector.broadcast %519 : f32 to vector<8x1xf32>
    %521 = arith.mulf %520, %518 : vector<8x1xf32>
    %522 = arith.addf %508, %521 : vector<8x1xf32>
    %c16_154 = arith.constant 16 : index
    %c32_155 = arith.constant 32 : index
    %523 = vector.load %arg11[%c16_154, %c32_155] : memref<64x64xf32, #tpu.memory_space<vmem>>, vector<8x32xf32>
    %524 = arith.addf %523, %493 : vector<8x32xf32>
    %525 = math.tanh %524 : vector<8x32xf32>
    %526 = arith.truncf %525 : vector<8x32xf32> to vector<8x32xbf16>
    %cst_156 = arith.constant dense<0.000000e+00> : vector<8x2xf32>
    %527 = tpu.matmul %526, %389, %cst_156 {dimension_numbers = #tpu.dot_dimension_numbers<[1], [0], [0], [1], [0, 0, 1, 1], [], []>} : vector<8x32xbf16>, vector<32x2xbf16>, vector<8x2xf32> -> vector<8x2xf32>
    %528 = vector.extract_strided_slice %527 {offsets = [0, 1], sizes = [8, 1], strides = [1, 1]} : vector<8x2xf32> to vector<8x1xf32>
    %529 = vector.broadcast %490 : f32 to vector<8x1xf32>
    %530 = arith.addf %528, %529 : vector<8x1xf32>
    %531 = vector.extract_strided_slice %0 {offsets = [16, 1], sizes = [8, 1], strides = [1, 1]} : vector<64x2xf32> to vector<8x1xf32>
    %532 = arith.mulf %530, %531 : vector<8x1xf32>
    %c2 = arith.constant 2 : index
    %533 = memref.load %arg8[%c2] : memref<11xf32, #tpu.memory_space<smem>>
    %534 = vector.broadcast %533 : f32 to vector<8x1xf32>
    %535 = arith.mulf %534, %532 : vector<8x1xf32>
    %536 = arith.addf %522, %535 : vector<8x1xf32>
    %c24_157 = arith.constant 24 : index
    %c32_158 = arith.constant 32 : index
    %537 = vector.load %arg11[%c24_157, %c32_158] : memref<64x64xf32, #tpu.memory_space<vmem>>, vector<8x32xf32>
    %538 = arith.addf %537, %493 : vector<8x32xf32>
    %539 = math.tanh %538 : vector<8x32xf32>
    %540 = arith.truncf %539 : vector<8x32xf32> to vector<8x32xbf16>
    %cst_159 = arith.constant dense<0.000000e+00> : vector<8x2xf32>
    %541 = tpu.matmul %540, %389, %cst_159 {dimension_numbers = #tpu.dot_dimension_numbers<[1], [0], [0], [1], [0, 0, 1, 1], [], []>} : vector<8x32xbf16>, vector<32x2xbf16>, vector<8x2xf32> -> vector<8x2xf32>
    %542 = vector.extract_strided_slice %541 {offsets = [0, 1], sizes = [8, 1], strides = [1, 1]} : vector<8x2xf32> to vector<8x1xf32>
    %543 = vector.broadcast %490 : f32 to vector<8x1xf32>
    %544 = arith.addf %542, %543 : vector<8x1xf32>
    %545 = vector.extract_strided_slice %0 {offsets = [24, 1], sizes = [8, 1], strides = [1, 1]} : vector<64x2xf32> to vector<8x1xf32>
    %546 = arith.mulf %544, %545 : vector<8x1xf32>
    %c3 = arith.constant 3 : index
    %547 = memref.load %arg8[%c3] : memref<11xf32, #tpu.memory_space<smem>>
    %548 = vector.broadcast %547 : f32 to vector<8x1xf32>
    %549 = arith.mulf %548, %546 : vector<8x1xf32>
    %550 = arith.addf %536, %549 : vector<8x1xf32>
    %c32_160 = arith.constant 32 : index
    %c32_161 = arith.constant 32 : index
    %551 = vector.load %arg11[%c32_160, %c32_161] : memref<64x64xf32, #tpu.memory_space<vmem>>, vector<8x32xf32>
    %552 = arith.addf %551, %493 : vector<8x32xf32>
    %553 = math.tanh %552 : vector<8x32xf32>
    %554 = arith.truncf %553 : vector<8x32xf32> to vector<8x32xbf16>
    %cst_162 = arith.constant dense<0.000000e+00> : vector<8x2xf32>
    %555 = tpu.matmul %554, %389, %cst_162 {dimension_numbers = #tpu.dot_dimension_numbers<[1], [0], [0], [1], [0, 0, 1, 1], [], []>} : vector<8x32xbf16>, vector<32x2xbf16>, vector<8x2xf32> -> vector<8x2xf32>
    %556 = vector.extract_strided_slice %555 {offsets = [0, 1], sizes = [8, 1], strides = [1, 1]} : vector<8x2xf32> to vector<8x1xf32>
    %557 = vector.broadcast %490 : f32 to vector<8x1xf32>
    %558 = arith.addf %556, %557 : vector<8x1xf32>
    %559 = vector.extract_strided_slice %0 {offsets = [32, 1], sizes = [8, 1], strides = [1, 1]} : vector<64x2xf32> to vector<8x1xf32>
    %560 = arith.mulf %558, %559 : vector<8x1xf32>
    %c4 = arith.constant 4 : index
    %561 = memref.load %arg8[%c4] : memref<11xf32, #tpu.memory_space<smem>>
    %562 = vector.broadcast %561 : f32 to vector<8x1xf32>
    %563 = arith.mulf %562, %560 : vector<8x1xf32>
    %564 = arith.addf %550, %563 : vector<8x1xf32>
    %c40_163 = arith.constant 40 : index
    %c32_164 = arith.constant 32 : index
    %565 = vector.load %arg11[%c40_163, %c32_164] : memref<64x64xf32, #tpu.memory_space<vmem>>, vector<8x32xf32>
    %566 = arith.addf %565, %493 : vector<8x32xf32>
    %567 = math.tanh %566 : vector<8x32xf32>
    %568 = arith.truncf %567 : vector<8x32xf32> to vector<8x32xbf16>
    %cst_165 = arith.constant dense<0.000000e+00> : vector<8x2xf32>
    %569 = tpu.matmul %568, %389, %cst_165 {dimension_numbers = #tpu.dot_dimension_numbers<[1], [0], [0], [1], [0, 0, 1, 1], [], []>} : vector<8x32xbf16>, vector<32x2xbf16>, vector<8x2xf32> -> vector<8x2xf32>
    %570 = vector.extract_strided_slice %569 {offsets = [0, 1], sizes = [8, 1], strides = [1, 1]} : vector<8x2xf32> to vector<8x1xf32>
    %571 = vector.broadcast %490 : f32 to vector<8x1xf32>
    %572 = arith.addf %570, %571 : vector<8x1xf32>
    %573 = vector.extract_strided_slice %0 {offsets = [40, 1], sizes = [8, 1], strides = [1, 1]} : vector<64x2xf32> to vector<8x1xf32>
    %574 = arith.mulf %572, %573 : vector<8x1xf32>
    %c5 = arith.constant 5 : index
    %575 = memref.load %arg8[%c5] : memref<11xf32, #tpu.memory_space<smem>>
    %576 = vector.broadcast %575 : f32 to vector<8x1xf32>
    %577 = arith.mulf %576, %574 : vector<8x1xf32>
    %578 = arith.addf %564, %577 : vector<8x1xf32>
    %c48_166 = arith.constant 48 : index
    %c32_167 = arith.constant 32 : index
    %579 = vector.load %arg11[%c48_166, %c32_167] : memref<64x64xf32, #tpu.memory_space<vmem>>, vector<8x32xf32>
    %580 = arith.addf %579, %493 : vector<8x32xf32>
    %581 = math.tanh %580 : vector<8x32xf32>
    %582 = arith.truncf %581 : vector<8x32xf32> to vector<8x32xbf16>
    %cst_168 = arith.constant dense<0.000000e+00> : vector<8x2xf32>
    %583 = tpu.matmul %582, %389, %cst_168 {dimension_numbers = #tpu.dot_dimension_numbers<[1], [0], [0], [1], [0, 0, 1, 1], [], []>} : vector<8x32xbf16>, vector<32x2xbf16>, vector<8x2xf32> -> vector<8x2xf32>
    %584 = vector.extract_strided_slice %583 {offsets = [0, 1], sizes = [8, 1], strides = [1, 1]} : vector<8x2xf32> to vector<8x1xf32>
    %585 = vector.broadcast %490 : f32 to vector<8x1xf32>
    %586 = arith.addf %584, %585 : vector<8x1xf32>
    %587 = vector.extract_strided_slice %0 {offsets = [48, 1], sizes = [8, 1], strides = [1, 1]} : vector<64x2xf32> to vector<8x1xf32>
    %588 = arith.mulf %586, %587 : vector<8x1xf32>
    %c6 = arith.constant 6 : index
    %589 = memref.load %arg8[%c6] : memref<11xf32, #tpu.memory_space<smem>>
    %590 = vector.broadcast %589 : f32 to vector<8x1xf32>
    %591 = arith.mulf %590, %588 : vector<8x1xf32>
    %592 = arith.addf %578, %591 : vector<8x1xf32>
    %c56_169 = arith.constant 56 : index
    %c32_170 = arith.constant 32 : index
    %593 = vector.load %arg11[%c56_169, %c32_170] : memref<64x64xf32, #tpu.memory_space<vmem>>, vector<8x32xf32>
    %594 = arith.addf %593, %493 : vector<8x32xf32>
    %595 = math.tanh %594 : vector<8x32xf32>
    %596 = arith.truncf %595 : vector<8x32xf32> to vector<8x32xbf16>
    %cst_171 = arith.constant dense<0.000000e+00> : vector<8x2xf32>
    %597 = tpu.matmul %596, %389, %cst_171 {dimension_numbers = #tpu.dot_dimension_numbers<[1], [0], [0], [1], [0, 0, 1, 1], [], []>} : vector<8x32xbf16>, vector<32x2xbf16>, vector<8x2xf32> -> vector<8x2xf32>
    %598 = vector.extract_strided_slice %597 {offsets = [0, 1], sizes = [8, 1], strides = [1, 1]} : vector<8x2xf32> to vector<8x1xf32>
    %599 = vector.broadcast %490 : f32 to vector<8x1xf32>
    %600 = arith.addf %598, %599 : vector<8x1xf32>
    %601 = vector.extract_strided_slice %0 {offsets = [56, 1], sizes = [8, 1], strides = [1, 1]} : vector<64x2xf32> to vector<8x1xf32>
    %602 = arith.mulf %600, %601 : vector<8x1xf32>
    %c7 = arith.constant 7 : index
    %603 = memref.load %arg8[%c7] : memref<11xf32, #tpu.memory_space<smem>>
    %604 = vector.broadcast %603 : f32 to vector<8x1xf32>
    %605 = arith.mulf %604, %602 : vector<8x1xf32>
    %606 = arith.addf %592, %605 : vector<8x1xf32>
    %c10 = arith.constant 10 : index
    %607 = memref.load %arg8[%c10] : memref<11xf32, #tpu.memory_space<smem>>
    %608 = vector.broadcast %607 : f32 to vector<8x1xf32>
    %609 = arith.addf %606, %608 : vector<8x1xf32>
    %c0_172 = arith.constant 0 : index
    %c0_173 = arith.constant 0 : index
    %610 = vector.load %arg9[%c0_172, %c0_173] : memref<8x1xf32, #tpu.memory_space<vmem>>, vector<8x1xf32>
    tpu.vector_store %arg9[%c0_172, %c0_173], %609 {strides = array<i32>} : memref<8x1xf32, #tpu.memory_space<vmem>>, vector<8x1xf32>,
    return
  }
}

</mosaic_0001>

<bundles_post_ra>
// kernel: tpu_custom_call.1
= control target key start
LH: loop header
LB: loop body
LE: loop exit
PB: predicated region body
PF: predicated region fallthrough
CT: control target
= control target key end

     0   :  { %14 = vsyncpa [#allocation5], 0  ;;  %s1882_s12 = smov [#allocation4]   ;;  %s2484_s0 = inlined_call_operand.vmem [shape: f32[64,2], index: 0, kind: input, shape index: {}]   ;;  %s2485_s1 = inlined_call_operand.vmem [shape: f32[3,32], index: 1, kind: input, shape index: {}]   ;;  %s2486_s2 = inlined_call_operand.vmem [shape: bf16[32,128], index: 2, kind: input, shape index: {}]   ;;  %s2487_s3 = inlined_call_operand.vmem [shape: bf16[32,128], index: 3, kind: input, shape index: {}]   ;;  %s2488_s4 = inlined_call_operand.vmem [shape: f32[1,128], index: 4, kind: input, shape index: {}]   ;;  %s2489_s5 = inlined_call_operand.vmem [shape: bf16[32,64], index: 5, kind: input, shape index: {}]   ;;  %s2490_s6 = inlined_call_operand.vmem [shape: bf16[32,64], index: 6, kind: input, shape index: {}]   ;;  %s2491_s7 = inlined_call_operand.vmem [shape: bf16[32,2], index: 7, kind: input, shape index: {}]   ;;  %s2492_s8 = inlined_call_operand.vmem [shape: f32[11], index: 8, kind: input, shape index: {}]   ;;  %s2493_s9 = inlined_call_operand.vmem [shape: f32[8,1], index: 9, kind: output, shape index: {}]  }
   0x1   :  { %s36_s11 = sshll.u32 %s2492_s8, 4  ;;  %s37_s11 = int_to_ptr.vmem [resolvable:$true] %s36_s11 }
   0x2   :  { %39 = dma.vmem_to_smem %s37_s11, 16, %s1882_s12, [#allocation5]  }
   0x3   :  { %1880 = dma.done.wait [#allocation5], 16  }
   0x4   :  { %1881 = vsyncadd [#allocation5], 4294967280 }
   0x5   :  { %44 = sfence }
   0x6   :  { %v1946_v0 = vld [vmem:[%s2484_s0] sm:$0xff]  ;;  %v1951_v1 = vld [vmem:[%s2484_s0 + $0x8] sm:$0xff]  ;;  %v1956_v2 = vld [vmem:[%s2484_s0 + $0x10] sm:$0xff]  ;;  %vm55_vm0 = vcmask 7168   ;;  %v1883_v23 = vmov 64.0   ;;  %v1884_v37 = vmov 0  }
   0x7   :  { %v1961_v3 = vld [vmem:[%s2484_s0 + $0x18] sm:$0xff]  ;;  %v56_v4 = vsel %vm55_vm0, %v1946_v0, 0.0  ;;  %v57_v5 = vsel %vm55_vm0, %v1951_v1, 0.0  ;;  %v59_v6 = vsel %vm55_vm0, %v1956_v2, 0.0  ;;  %v1972_v7 = vld [vmem:[%s2484_s0 + $0x20] sm:$0xff]  ;;  %v1979_v10 = vld [vmem:[%s2484_s0 + $0x28] sm:$0xff]  ;;  %1760 = vrcp.f32 %v1883_v23  ;;  %1745 = vset.pattern.permute.xlu1 %v1884_v37  ;;  %1748 = vset.pattern.permute.xlu0 %v1884_v37 }
   0x8   :  { %v58_v8 = vadd.f32 %v57_v5, %v56_v4  ;;  %v61_v9 = vsel %vm55_vm0, %v1961_v3, 0.0  ;;  %v63_v12 = vsel %vm55_vm0, %v1972_v7, 0.0  ;;  %v52_v13 = vld [vmem:[%s2484_s0 + $0x30] sm:$0xff]  ;;  %v65_v15 = vsel %vm55_vm0, %v1979_v10, 0.0  ;;  %v53_v16 = vld [vmem:[%s2484_s0 + $0x38] sm:$0xff]  ;;  %v1721_v23 = vld [vmem:[%s2486_s2] sm:$0xff] }
   0x9   :  { %v67_v18 = vsel %vm55_vm0, %v52_v13, 0.0  ;;  %v69_v20 = vsel %vm55_vm0, %v53_v16, 0.0  ;;  %vm240_vm5 = vcmask 261120   ;;  %s1885_s20 = smov 64   ;;  %vm290_vm10 = vcmp.gt.f32.partialorder %v1946_v0, 0.0  ;;  %s1888_s14 = smov 96  }
   0xa   :  { %v60_v11 = vadd.f32 %v59_v6, %v58_v8  ;;  %vm400_vm12 = vcmask 523264   ;;  %s1703_s15 = sld [smem:[#allocation4 + $0x9]]  ;;  %s1889_s10 = smov 127  }
   0xb   :  { %s1707_s16 = sld [smem:[#allocation4 + $0x1]] }
   0xc   :  { %v62_v14 = vadd.f32 %v61_v9, %v60_v11  ;;  %s1413_s17 = sld [smem:[#allocation4]] }
   0xd   :  { %v1761_v24 = vpop.eup %1760  ;;  %s1709_s18 = sld [smem:[#allocation4 + $0x2]] }
   0xe   :  { %v64_v17 = vadd.f32 %v63_v12, %v62_v14  ;;  %v81_v25 = vmul.f32 64.0, %v1761_v24  ;;  %vm85_vm1 = vweird.f32 %v1761_v24  ;;  %s1715_s22 = sld [smem:[#allocation4 + $0x5]] }
   0xf   :  { %s2466_s23 = sld [smem:[#allocation4 + $0x6]] }
  0x10   :  { %v66_v19 = vadd.f32 %v65_v15, %v64_v17  ;;  %v82_v26 = vsub.f32 1.0, %v81_v25  ;;  %s1719_s27 = sld [smem:[#allocation4 + $0x7]] }
  0x12   :  { %v68_v21 = vadd.f32 %v67_v18, %v66_v19  ;;  %v83_v30 = vmul.f32 %v1761_v24, %v82_v26  ;;  %v2039_v19 = vld [vmem:[%s2487_s3 + $0x8] sm:$0xff] }
  0x13   :  { %312 = vmatpush.bf16.msra.mxu1 %v2039_v19  ;;  %409 = vmatpush.bf16.msra.mxu3 %v2039_v19 }
  0x14   :  { %v70_v22 = vadd.f32 %v69_v20, %v68_v21  ;;  %v84_v33 = vadd.f32 %v1761_v24, %v83_v30  ;;  %v2046_v20 = vld [vmem:[%s2487_s3] sm:$0xff]  ;;  %v1722_v21 = vld [vmem:[%s2486_s2 + $0x8] sm:$0xff]  ;;  %s1711_s2 = sld [smem:[#allocation4 + $0x3]] }
  0x15   :  { %259 = vmatpush.bf16.msra.mxu0 %v1722_v21  ;;  %v357_v21 = vsel %vm290_vm10, 1, %v1884_v37 }
  0x16   :  { %71 = vadd.xlane.f32.xlu0 %v70_v22  ;;  %v86_v36 = vsel %vm85_vm1, %v1761_v24, %v84_v33  ;;  %v54_v22 = vld [vmem:[%s2485_s1] sm:$0x7] }
  0x17   :  { %313 = vmatpush.bf16.msra.mxu1 %v2046_v20  ;;  %410 = vmatpush.bf16.msra.mxu3 %v2046_v20  ;;  %v143_v24 = vmul.f32 %v54_v22, %v54_v22 }
  0x19   :  { %260 = vmatpush.bf16.msra.mxu0 %v1721_v23 }
  0x1a   :  { %314 = vmatmul.bf16.vlgmr.msra.gmra.mxu1 %v1884_v37 }
  0x1d   :  { %869 = vmatpush.bf16.msrb.mxu0 %v2039_v19 }
  0x21   :  { %870 = vmatpush.bf16.msrb.mxu0 %v2046_v20 }
  0x89   :  { %v72_v27 = vpop.xlane.xlu0 %71 }
  0x8a   :  { %v73_v28 = vrot.slane %v72_v27, 4 }
  0x8c   :  { %v74_v29 = vadd.f32 %v73_v28, %v72_v27 }
  0x8e   :  { %v75_v31 = vrot.slane %v74_v29, 2 }
  0x90   :  { %v76_v32 = vadd.f32 %v75_v31, %v74_v29  ;;  %v140_v31 = vrot.slane %v54_v22, 1 }
  0x92   :  { %v77_v34 = vrot.slane %v76_v32, 1 }
  0x94   :  { %v78_v35 = vadd.f32 %v77_v34, %v76_v32 }
  0x96   :  { %1731 = vpush %v78_v35  ;;  %v142_v35 = vmul.f32 %v140_v31, %v54_v22 }
  0x97   :  { %1733 = vpush %v86_v36 }
  0xc7   :  { %s1732_s28 = spop %1731 }
  0xc8   :  { %s1995_s29 = spop %1733 }
  0xc9   :  { %s88_s30 = smul.f32 %s1995_s29, %s1732_s28  ;;  %s1720_s28 = sld [smem:[#allocation4 + $0xa]] }
  0xcb   :  { %v89_v38 = vstv %s88_s30 }
  0xcc   :  { %v90_v39 = vsub.f32 %v1946_v0, %v89_v38  ;;  %v91_v40 = vsub.f32 %v1951_v1, %v89_v38  ;;  %v2001_v41 = vsub.f32 %v1956_v2, %v89_v38  ;;  %v2004_v42 = vsub.f32 %v1961_v3, %v89_v38  ;;  %v2093_v0 = vld [vmem:[%s2489_s5 + $0x8] sm:$0xff] }
  0xcd   :  { %v2009_v46 = vsub.f32 %v1972_v7, %v89_v38  ;;  %v2014_v49 = vsub.f32 %v1979_v10, %v89_v38  ;;  %v2019_v53 = vsub.f32 %v52_v13, %v89_v38  ;;  %v2023_v56 = vsub.f32 %v53_v16, %v89_v38  ;;  %393 = vmatpush.bf16.msra.mxu2 %v2093_v0 }
  0xce   :  { %160 = vperm.xlu1 %1745, %v90_v39   ;;  %v98_v43 = vmul.f32 %v90_v39, %v90_v39  ;;  %v99_v44 = vmul.f32 %v91_v40, %v91_v40  ;;  %v100_v45 = vmul.f32 %v2001_v41, %v2001_v41  ;;  %v101_v50 = vmul.f32 %v2004_v42, %v2004_v42 }
  0xcf   :  { %v102_v54 = vmul.f32 %v2009_v46, %v2009_v46  ;;  %v103_v57 = vmul.f32 %v2014_v49, %v2014_v49  ;;  %v104_v60 = vmul.f32 %v2019_v53, %v2019_v53  ;;  %v105_v63 = vmul.f32 %v2023_v56, %v2023_v56  ;;  %479 = vmatpush.bf16.msrb.mxu1 %v2093_v0 }
  0xd0   :  { %v106_v47 = vsel %vm55_vm0, %v98_v43, 0.0  ;;  %v107_v48 = vsel %vm55_vm0, %v99_v44, 0.0  ;;  %v109_v52 = vsel %vm55_vm0, %v100_v45, 0.0  ;;  %v111_v58 = vsel %vm55_vm0, %v101_v50, 0.0  ;;  %571 = vmatpush.bf16.msrb.mxu3 %v2093_v0 }
  0xd1   :  { %v108_v51 = vadd.f32 %v107_v48, %v106_v47  ;;  %v113_v61 = vsel %vm55_vm0, %v102_v54, 0.0  ;;  %v115_v4 = vsel %vm55_vm0, %v103_v57, 0.0  ;;  %v117_v6 = vsel %vm55_vm0, %v104_v60, 0.0 }
  0xd2   :  { %v119_v9 = vsel %vm55_vm0, %v105_v63, 0.0  ;;  %v2065_v43 = vperm.slane %v54_v22, 2 }
  0xd3   :  { %v110_v55 = vadd.f32 %v109_v52, %v108_v51  ;;  %v315_v52 = vpop.f32.mrf.mxu1 }
  0xd5   :  { %v112_v59 = vadd.f32 %v111_v58, %v110_v55  ;;  %v2075_v55 = vld [vmem:[%s2488_s4] ss:$0 sm:$0xff]  ;;  %s1886_s4 = smov 32  }
  0xd6   :  { %165 = vperm.xlu1 %1745, %v91_v40  }
  0xd7   :  { %v114_v62 = vadd.f32 %v113_v61, %v112_v59 }
  0xd9   :  { %v116_v5 = vadd.f32 %v115_v4, %v114_v62 }
  0xdb   :  { %v118_v8 = vadd.f32 %v117_v6, %v116_v5  ;;  %v317_v54 = vpop.f32.mrf.mxu1 }
  0xdd   :  { %v120_v11 = vadd.f32 %v119_v9, %v118_v8 }
  0xdf   :  { %121 = vadd.xlane.f32.xlu0 %v120_v11 }
 0x140   :  { %v161_v32 = vpop.permute.xlu1 %160 }
 0x148   :  { %v166_v44 = vpop.permute.xlu1 %165 }
 0x152   :  { %v122_v12 = vpop.xlane.xlu0 %121 }
 0x153   :  { %v123_v13 = vrot.slane %v122_v12, 4 }
 0x155   :  { %v124_v14 = vadd.f32 %v123_v13, %v122_v12 }
 0x157   :  { %v125_v15 = vrot.slane %v124_v14, 2 }
 0x159   :  { %v126_v16 = vadd.f32 %v125_v15, %v124_v14 }
 0x15b   :  { %v127_v17 = vrot.slane %v126_v16, 1 }
 0x15d   :  { %v128_v18 = vadd.f32 %v127_v17, %v126_v16 }
 0x15f   :  { %1735 = vpush %v128_v18  ;;  %v1887_v18 = vmov 1  }
 0x160   :  { %1746 = vset.pattern.permute.xlu1 %v1887_v18  ;;  %1747 = vset.pattern.permute.xlu2 %v1887_v18 }
 0x161   :  { %359 = vperm.xlu1 %1746, %v357_v21  }
 0x169   :  { %1749 = vset.pattern.permute.xlu1 %v1884_v37 }
 0x190   :  { %s1736_s19 = spop %1735 }
 0x191   :  { %s138_s3 = smul.f32 %s1736_s19, %s1995_s29 }
 0x193   :  { %v144_v25 = vstv %s138_s3 }
 0x194   :  { %v145_v26 = vmul.f32 %v144_v25, %v143_v24 }
 0x196   :  { %v146_v27 = vadd.f32 1e-05, %v145_v26  ;;  %v2099_v26 = vld [vmem:[%s2489_s5] sm:$0xff] }
 0x197   :  { %394 = vmatpush.bf16.msra.mxu2 %v2099_v26  ;;  %480 = vmatpush.bf16.msrb.mxu1 %v2099_v26 }
 0x198   :  { %1762 = vrsqrt.f32 %v146_v27  ;;  %vm153_vm3 = vweird.f32 %v146_v27  ;;  %572 = vmatpush.bf16.msrb.mxu3 %v2099_v26 }
 0x19b   :  { %501 = vmatpush.bf16.msrb.mxu2 %v2039_v19  ;;  %593 = vmatpush.bf16.msra.mxu1 %v2039_v19 }
 0x19e   :  { %v1763_v28 = vpop.eup %1762 }
 0x19f   :  { %v148_v29 = vmul.f32 %v1763_v28, %v146_v27  ;;  %vm154_vm2 = vweird.f32 %v1763_v28  ;;  %502 = vmatpush.bf16.msrb.mxu2 %v2046_v20  ;;  %594 = vmatpush.bf16.msra.mxu1 %v2046_v20 }
 0x1a0   :  { %vm155_vm4 = vmor %vm153_vm3, %vm154_vm2  ;;  %vm402_vm2 = vcmp.gt.f32.partialorder %v1951_v1, 0.0 }
 0x1a1   :  { %v149_v30 = vmul.f32 %v1763_v28, %v148_v29 }
 0x1a3   :  { %v150_v33 = vmul.f32 0.5, %v149_v30 }
 0x1a5   :  { %v151_v34 = vsub.f32 1.5, %v150_v33 }
 0x1a7   :  { %v152_v36 = vmul.f32 %v1763_v28, %v151_v34 }
 0x1a9   :  { %v156_v38 = vsel %vm155_vm4, %v1763_v28, %v152_v36 }
 0x1aa   :  { %v157_v39 = vmul.f32 %v156_v38, %v142_v35 }
 0x1ac   :  { %v2063_v40 = vperm.slane %v157_v39, 0 }
 0x1ae   :  { %v199_v45 = vmul.f32 %v2063_v40, %v161_v32  ;;  %v200_v47 = vmul.f32 %v2063_v40, %v166_v44 }
 0x1b0   :  { %v208_v48 = vadd.f32 %v2065_v43, %v199_v45  ;;  %v209_v50 = vadd.f32 %v2065_v43, %v200_v47 }
 0x1b2   :  { %v216_v51 = vpack.c.bf16 %v209_v50, %v208_v48 }
 0x1b4   :  { %1634 = vmatmul.msk.bf16.vlgmr.msra.gmra.mxu0 %vm240_vm5, %v216_v51 }
 0x231   :  { %v262_v57 = vpop.f32.mrf.mxu0 }
 0x232   :  { %v263_v58 = vadd.f32 %v2075_v55, %v262_v57 }
 0x234   :  { %v319_v59 = vadd.f32 %v315_v52, %v263_v58 }
 0x236   :  { %1764 = vtanh.f32 %v319_v59  ;;  %v1646_v61 = vmul.f32 -1.442695, %v319_v59 }
 0x238   :  { %1766 = vpow2.f32 %v1646_v61 }
 0x239   :  { %v264_v32 = vpop.f32.mrf.mxu0 }
 0x23a   :  { %v265_v33 = vadd.f32 %v2075_v55, %v264_v32 }
 0x23c   :  { %v1765_v60 = vpop.eup %1764 }
 0x23d   :  { %342 = vrot.lane.b32.xlu2 %v1765_v60, %s1885_s20 }
 0x23e   :  { %v1767_v62 = vpop.eup %1766 }
 0x23f   :  { %v323_v63 = vadd.f32 1.0, %v1767_v62 }
 0x241   :  { %1768 = vrcp.f32 %v323_v63  ;;  %v335_v11 = vand.u32 2147483648, %v323_v63  ;;  %vm329_vm7 = vweird.f32 %v323_v63  ;;  %v333_v12 = vand.u32 2147483647, %v323_v63 }
 0x243   :  { %v336_v14 = vor.u32 1.1754944e-38, %v335_v11  ;;  %vm334_vm9 = vcmp.eq.f32.partialorder %v333_v12, 8.507059e+37 }
 0x247   :  { %v1769_v4 = vpop.eup %1768 }
 0x248   :  { %v325_v5 = vmul.f32 %v1769_v4, %v323_v63  ;;  %vm330_vm6 = vweird.f32 %v1769_v4 }
 0x249   :  { %vm331_vm8 = vmor %vm329_vm7, %vm330_vm6 }
 0x24a   :  { %v326_v6 = vsub.f32 1.0, %v325_v5  ;;  %v454_v5 = vsel %vm402_vm2, 1, %v1884_v37 }
 0x24c   :  { %v327_v8 = vmul.f32 %v1769_v4, %v326_v6 }
 0x24e   :  { %v328_v9 = vadd.f32 %v1769_v4, %v327_v8 }
 0x250   :  { %v332_v13 = vsel %vm331_vm8, %v1769_v4, %v328_v9 }
 0x251   :  { %v337_v16 = vsel %vm334_vm9, %v336_v14, %v332_v13  ;;  %vm487_vm9 = vcmp.gt.f32.partialorder %v1956_v2, 0.0 }
 0x252   :  { %v340_v22 = vmul.f32 0.0, %v337_v16 }
 0x297   :  { %v343_v15 = vpop.permute.xlu2 %342 }
 0x298   :  { %v345_v17 = vmul.f32 %v343_v15, %v337_v16 }
 0x29a   :  { %347 = vrot.lane.b32.xlu2 %v345_v17, %s1886_s4 }
 0x2f4   :  { %v348_v23 = vpop.permute.xlu2 %347 }
 0x2f5   :  { %v2085_v24 = vadd.f32 %v348_v23, %v340_v22 }
 0x2f7   :  { %1770 = vtanh.f32 %v2085_v24 }
 0x2fd   :  { %v1771_v25 = vpop.eup %1770 }
 0x2fe   :  { %353 = vrot.lane.b32.xlu0 %v1771_v25, %s1885_s20 }
 0x306   :  { %170 = vperm.xlu0 %1748, %v2001_v41   ;;  %v360_v41 = vpop.permute.xlu1 %359 }
 0x307   :  { %vm361_vm11 = vcmp.eq.s32.totalorder %v360_v41, 1 }
 0x370   :  { %v354_v27 = vpop.permute.xlu0 %353 }
 0x371   :  { %v356_v28 = vmul.f32 %v354_v27, %v337_v16 }
 0x373   :  { %v2110_v29 = vsel %vm361_vm11, %v356_v28, 0.0  ;;  %vm579_vm11 = vcmp.gt.f32.partialorder %v1961_v3, 0.0 }
 0x374   :  { %v368_v30 = vpack.c.bf16 %v2110_v29, %v2110_v29 }
 0x376   :  { %370 = vrot.lane.b32.xlu2 %v368_v30, %s1886_s4 }
 0x378   :  { %v171_v16 = vpop.permute.xlu0 %170 }
 0x379   :  { %v201_v21 = vmul.f32 %v2063_v40, %v171_v16 }
 0x37b   :  { %v210_v23 = vadd.f32 %v2065_v43, %v201_v21 }
 0x3d0   :  { %v371_v31 = vpop.permute.xlu2 %370 }
 0x3d1   :  { %1655 = vmatmul.msk.bf16.vlgmr.msra.gmra.mxu2 %vm240_vm5, %v371_v31  ;;  %1656 = vmatmul.msk.bf16.vlgmr.msra.gmra.mxu3 %vm240_vm5, %v371_v31 }
 0x3d2   :  { %685 = vmatpush.bf16.msra.mxu3 %v2039_v19  ;;  %663 = vmatpush.bf16.msra.mxu2 %v2093_v0 }
 0x3d6   :  { %686 = vmatpush.bf16.msra.mxu3 %v2046_v20  ;;  %664 = vmatpush.bf16.msra.mxu2 %v2099_v26 }
 0x454   :  { %v396_v34 = vpop.f32.mrf.mxu2  ;;  %v412_v35 = vpop.f32.mrf.mxu3 }
 0x455   :  { %401 = vst.msk [vmem:[#allocation3] sm:$0xff] %vm400_vm12, %v396_v34  ;;  %v416_v36 = vadd.f32 %v412_v35, %v265_v33 }
 0x457   :  { %1772 = vtanh.f32 %v416_v36  ;;  %v1657_v45 = vmul.f32 -1.442695, %v416_v36 }
 0x459   :  { %1774 = vpow2.f32 %v1657_v45 }
 0x45c   :  { %v398_v38 = vpop.f32.mrf.mxu2  ;;  %v414_v39 = vpop.f32.mrf.mxu3 }
 0x45d   :  { %v1773_v44 = vpop.eup %1772 }
 0x45e   :  { %439 = vrot.lane.b32.xlu1 %v1773_v44, %s1885_s20 }
 0x45f   :  { %v1775_v47 = vpop.eup %1774 }
 0x460   :  { %v420_v48 = vadd.f32 1.0, %v1775_v47 }
 0x462   :  { %1776 = vrcp.f32 %v420_v48  ;;  %v432_v58 = vand.u32 2147483648, %v420_v48  ;;  %vm426_vm14 = vweird.f32 %v420_v48  ;;  %v430_v59 = vand.u32 2147483647, %v420_v48 }
 0x464   :  { %v433_v61 = vor.u32 1.1754944e-38, %v432_v58  ;;  %vm431_vm1 = vcmp.eq.f32.partialorder %v430_v59, 8.507059e+37 }
 0x468   :  { %v1777_v50 = vpop.eup %1776 }
 0x469   :  { %v422_v51 = vmul.f32 %v1777_v50, %v420_v48  ;;  %vm427_vm13 = vweird.f32 %v1777_v50 }
 0x46a   :  { %vm428_vm15 = vmor %vm426_vm14, %vm427_vm13 }
 0x46b   :  { %v423_v52 = vsub.f32 1.0, %v422_v51 }
 0x46d   :  { %v424_v54 = vmul.f32 %v1777_v50, %v423_v52 }
 0x46f   :  { %v425_v57 = vadd.f32 %v1777_v50, %v424_v54 }
 0x471   :  { %v429_v60 = vsel %vm428_vm15, %v1777_v50, %v425_v57 }
 0x472   :  { %v434_v63 = vsel %vm431_vm1, %v433_v61, %v429_v60  ;;  %v546_v60 = vsel %vm487_vm9, 1, %v1884_v37 }
 0x473   :  { %v437_v6 = vmul.f32 %v434_v63, %v2085_v24 }
 0x4d0   :  { %v440_v62 = vpop.permute.xlu1 %439 }
 0x4d1   :  { %v442_v4 = vmul.f32 %v440_v62, %v434_v63 }
 0x4d3   :  { %444 = vrot.lane.b32.xlu2 %v442_v4, %s1886_s4 }
 0x4db   :  { %456 = vperm.xlu2 %1747, %v454_v5  }
 0x4e3   :  { %1754 = vset.pattern.permute.xlu2 %v1884_v37 }
 0x52d   :  { %v445_v8 = vpop.permute.xlu2 %444 }
 0x52e   :  { %v447_v9 = vadd.f32 %v445_v8, %v437_v6 }
 0x530   :  { %1778 = vtanh.f32 %v447_v9 }
 0x535   :  { %v457_v12 = vpop.permute.xlu2 %456 }
 0x536   :  { %v1779_v11 = vpop.eup %1778  ;;  %vm458_vm3 = vcmp.eq.s32.totalorder %v457_v12, 1 }
 0x537   :  { %450 = vrot.lane.b32.xlu1 %v1779_v11, %s1885_s20 }
 0x53f   :  { %175 = vperm.xlu1 %1749, %v2004_v42  }
 0x547   :  { %1750 = vset.pattern.permute.xlu1 %v1887_v18 }
 0x5a9   :  { %v451_v13 = vpop.permute.xlu1 %450 }
 0x5aa   :  { %v453_v1 = vmul.f32 %v451_v13, %v434_v63 }
 0x5ac   :  { %v2132_v14 = vsel %vm458_vm3, %v453_v1, 0.0  ;;  %v2135_v15 = vsel %vm458_vm3, %v453_v1, %v2110_v29  ;;  %vm671_vm3 = vcmp.gt.f32.partialorder %v1972_v7, 0.0 }
 0x5ad   :  { %v488_v17 = vpack.c.bf16 %v2135_v15, %v2135_v15  ;;  %v466_v59 = vpack.c.bf16 %v2132_v14, %v2132_v14 }
 0x5af   :  { %490 = vrot.lane.b32.xlu2 %v488_v17, %s1886_s4 }
 0x5b1   :  { %v176_v42 = vpop.permute.xlu1 %175 }
 0x5b2   :  { %v202_v22 = vmul.f32 %v2063_v40, %v176_v42 }
 0x5b4   :  { %v211_v24 = vadd.f32 %v2065_v43, %v202_v22 }
 0x5b6   :  { %v217_v25 = vpack.c.bf16 %v211_v24, %v210_v23  ;;  %v638_v24 = vsel %vm579_vm11, 1, %v1884_v37 }
 0x5b8   :  { %1635 = vmatmul.msk.bf16.gmra.mxu0 %vm240_vm5, %v217_v25 }
 0x609   :  { %v491_v41 = vpop.permute.xlu2 %490 }
 0x60a   :  { %1659 = vmatmul.msk.bf16.vlgmr.msrb.gmra.mxu2 %vm240_vm5, %v491_v41 }
 0x60b   :  { %777 = vmatpush.bf16.msrb.mxu2 %v2039_v19 }
 0x60f   :  { %778 = vmatpush.bf16.msrb.mxu2 %v2046_v20 }
 0x635   :  { %v267_v27 = vpop.f32.mrf.mxu0 }
 0x636   :  { %v268_v28 = vadd.f32 %v2075_v55, %v267_v27 }
 0x63d   :  { %v269_v17 = vpop.f32.mrf.mxu0 }
 0x68d   :  { %v504_v30 = vpop.f32.mrf.mxu2 }
 0x68e   :  { %v508_v31 = vadd.f32 %v504_v30, %v268_v28 }
 0x690   :  { %1780 = vtanh.f32 %v508_v31  ;;  %v1660_v34 = vmul.f32 -1.442695, %v508_v31 }
 0x692   :  { %1782 = vpow2.f32 %v1660_v34 }
 0x695   :  { %v506_v32 = vpop.f32.mrf.mxu2 }
 0x696   :  { %v1781_v33 = vpop.eup %1780 }
 0x697   :  { %531 = vrot.lane.b32.xlu1 %v1781_v33, %s1885_s20 }
 0x698   :  { %v1783_v35 = vpop.eup %1782 }
 0x699   :  { %v512_v36 = vadd.f32 1.0, %v1783_v35 }
 0x69b   :  { %1784 = vrcp.f32 %v512_v36  ;;  %v524_v48 = vand.u32 2147483648, %v512_v36  ;;  %vm518_vm6 = vweird.f32 %v512_v36  ;;  %v522_v50 = vand.u32 2147483647, %v512_v36 }
 0x69d   :  { %v525_v52 = vor.u32 1.1754944e-38, %v524_v48  ;;  %vm523_vm8 = vcmp.eq.f32.partialorder %v522_v50, 8.507059e+37 }
 0x69f   :  { %548 = vperm.xlu1 %1750, %v546_v60  }
 0x6a1   :  { %v1785_v38 = vpop.eup %1784 }
 0x6a2   :  { %v514_v39 = vmul.f32 %v1785_v38, %v512_v36  ;;  %vm519_vm4 = vweird.f32 %v1785_v38 }
 0x6a3   :  { %vm520_vm7 = vmor %vm518_vm6, %vm519_vm4 }
 0x6a4   :  { %v515_v44 = vsub.f32 1.0, %v514_v39 }
 0x6a6   :  { %v516_v45 = vmul.f32 %v1785_v38, %v515_v44 }
 0x6a8   :  { %v517_v47 = vadd.f32 %v1785_v38, %v516_v45 }
 0x6aa   :  { %v521_v51 = vsel %vm520_vm7, %v1785_v38, %v517_v47 }
 0x6ab   :  { %v526_v57 = vsel %vm523_vm8, %v525_v52, %v521_v51 }
 0x6ac   :  { %v529_v61 = vmul.f32 %v526_v57, %v447_v9 }
 0x709   :  { %v532_v54 = vpop.permute.xlu1 %531 }
 0x70a   :  { %v534_v58 = vmul.f32 %v532_v54, %v526_v57 }
 0x70c   :  { %536 = vrot.lane.b32.xlu2 %v534_v58, %s1886_s4 }
 0x711   :  { %v549_v6 = vpop.permute.xlu1 %548 }
 0x712   :  { %vm550_vm10 = vcmp.eq.s32.totalorder %v549_v6, 1 }
 0x714   :  { %468 = vrot.lane.b32.xlu2 %v466_v59, %s1886_s4 }
 0x766   :  { %v537_v62 = vpop.permute.xlu2 %536 }
 0x767   :  { %v539_v63 = vadd.f32 %v537_v62, %v529_v61 }
 0x769   :  { %1786 = vtanh.f32 %v539_v63 }
 0x76e   :  { %v469_v4 = vpop.permute.xlu2 %468 }
 0x76f   :  { %v1787_v5 = vpop.eup %1786  ;;  %1658 = vmatmul.msk.bf16.vlgmr.msrb.gmra.mxu1 %vm240_vm5, %v469_v4 }
 0x770   :  { %542 = vrot.lane.b32.xlu0 %v1787_v5, %s1885_s20  ;;  %755 = vmatpush.bf16.msrb.mxu1 %v2093_v0 }
 0x774   :  { %756 = vmatpush.bf16.msrb.mxu1 %v2099_v26 }
 0x7e2   :  { %v543_v8 = vpop.permute.xlu0 %542 }
 0x7e3   :  { %v545_v2 = vmul.f32 %v543_v8, %v526_v57 }
 0x7e5   :  { %v2160_v11 = vsel %vm550_vm10, %v545_v2, 0.0  ;;  %v2163_v9 = vsel %vm550_vm10, %v545_v2, %v2135_v15  ;;  %v270_v15 = vadd.f32 %v2075_v55, %v269_v17 }
 0x7e6   :  { %v580_v12 = vpack.c.bf16 %v2163_v9, %v2163_v9  ;;  %v558_v44 = vpack.c.bf16 %v2160_v11, %v2160_v11 }
 0x7e8   :  { %582 = vrot.lane.b32.xlu0 %v580_v12, %s1886_s4 }
 0x7ec   :  { %v482_v13 = vpop.f32.mrf.mxu1 }
 0x7ed   :  { %486 = vst.msk [vmem:[#allocation3 + $0x8] sm:$0xff] %vm400_vm12, %v482_v13 }
 0x7f4   :  { %v484_v1 = vpop.f32.mrf.mxu1 }
 0x85a   :  { %v583_v16 = vpop.permute.xlu0 %582 }
 0x85b   :  { %1662 = vmatmul.msk.bf16.vlgmr.msra.gmra.mxu1 %vm240_vm5, %v583_v16 }
 0x85c   :  { %939 = vmatpush.bf16.msra.mxu1 %v2093_v0 }
 0x860   :  { %940 = vmatpush.bf16.msra.mxu1 %v2099_v26 }
 0x8d8   :  { %v596_v21 = vpop.f32.mrf.mxu1 }
 0x8d9   :  { %v600_v42 = vadd.f32 %v596_v21, %v270_v15 }
 0x8db   :  { %1788 = vtanh.f32 %v600_v42  ;;  %v1663_v25 = vmul.f32 -1.442695, %v600_v42 }
 0x8dd   :  { %1790 = vpow2.f32 %v1663_v25 }
 0x8e0   :  { %v598_v22 = vpop.f32.mrf.mxu1 }
 0x8e1   :  { %v1789_v23 = vpop.eup %1788 }
 0x8e2   :  { %623 = vrot.lane.b32.xlu1 %v1789_v23, %s1885_s20 }
 0x8e3   :  { %v1791_v41 = vpop.eup %1790 }
 0x8e4   :  { %v604_v27 = vadd.f32 1.0, %v1791_v41 }
 0x8e6   :  { %1792 = vrcp.f32 %v604_v27  ;;  %v616_v3 = vand.u32 2147483648, %v604_v27  ;;  %vm610_vm14 = vweird.f32 %v604_v27  ;;  %v614_v34 = vand.u32 2147483647, %v604_v27 }
 0x8e8   :  { %v617_v36 = vor.u32 1.1754944e-38, %v616_v3  ;;  %vm615_vm1 = vcmp.eq.f32.partialorder %v614_v34, 8.507059e+37 }
 0x8ea   :  { %640 = vperm.xlu1 %1750, %v638_v24  }
 0x8ec   :  { %v1793_v28 = vpop.eup %1792 }
 0x8ed   :  { %v606_v30 = vmul.f32 %v1793_v28, %v604_v27  ;;  %vm611_vm13 = vweird.f32 %v1793_v28 }
 0x8ee   :  { %vm612_vm15 = vmor %vm610_vm14, %vm611_vm13 }
 0x8ef   :  { %v607_v31 = vsub.f32 1.0, %v606_v30 }
 0x8f1   :  { %v608_v32 = vmul.f32 %v1793_v28, %v607_v31 }
 0x8f2   :  { %1751 = vset.pattern.permute.xlu1 %v1884_v37 }
 0x8f3   :  { %185 = vperm.xlu1 %1751, %v2014_v49   ;;  %v609_v33 = vadd.f32 %v1793_v28, %v608_v32 }
 0x8f5   :  { %v613_v35 = vsel %vm612_vm15, %v1793_v28, %v609_v33  ;;  %vm763_vm15 = vcmp.gt.f32.partialorder %v1979_v10, 0.0 }
 0x8f6   :  { %v618_v38 = vsel %vm615_vm1, %v617_v36, %v613_v35 }
 0x8f7   :  { %v621_v45 = vmul.f32 %v618_v38, %v539_v63 }
 0x8fb   :  { %1753 = vset.pattern.permute.xlu1 %v1887_v18 }
 0x954   :  { %v624_v49 = vpop.permute.xlu1 %623 }
 0x955   :  { %v626_v39 = vmul.f32 %v624_v49, %v618_v38 }
 0x957   :  { %628 = vrot.lane.b32.xlu2 %v626_v39, %s1886_s4 }
 0x95c   :  { %v641_v52 = vpop.permute.xlu1 %640 }
 0x95d   :  { %vm642_vm2 = vcmp.eq.s32.totalorder %v641_v52, 1 }
 0x95f   :  { %560 = vrot.lane.b32.xlu2 %v558_v44, %s1886_s4 }
 0x965   :  { %v186_v60 = vpop.permute.xlu1 %185 }
 0x966   :  { %v204_v62 = vmul.f32 %v2063_v40, %v186_v60 }
 0x968   :  { %v213_v4 = vadd.f32 %v2065_v43, %v204_v62 }
 0x9b1   :  { %v629_v47 = vpop.permute.xlu2 %628 }
 0x9b2   :  { %v2183_v48 = vadd.f32 %v629_v47, %v621_v45 }
 0x9b4   :  { %1794 = vtanh.f32 %v2183_v48 }
 0x9b9   :  { %v561_v50 = vpop.permute.xlu2 %560 }
 0x9ba   :  { %v1795_v51 = vpop.eup %1794  ;;  %1661 = vmatmul.msk.bf16.vlgmr.msrb.gmra.mxu3 %vm240_vm5, %v561_v50 }
 0x9bb   :  { %634 = vrot.lane.b32.xlu0 %v1795_v51, %s1885_s20  ;;  %847 = vmatpush.bf16.msrb.mxu3 %v2093_v0 }
 0x9bf   :  { %848 = vmatpush.bf16.msrb.mxu3 %v2099_v26 }
 0x9c3   :  { %180 = vperm.xlu0 %1748, %v2009_v46  }
 0x9cb   :  { %1752 = vset.pattern.permute.xlu0 %v1887_v18 }
 0xa2d   :  { %v635_v54 = vpop.permute.xlu0 %634 }
 0xa2e   :  { %v637_v57 = vmul.f32 %v635_v54, %v618_v38 }
 0xa30   :  { %v2192_v58 = vsel %vm642_vm2, %v637_v57, 0.0  ;;  %v2195_v59 = vsel %vm642_vm2, %v637_v57, %v2163_v9 }
 0xa31   :  { %v672_v61 = vpack.c.bf16 %v2195_v59, %v2195_v59  ;;  %v650_v3 = vpack.c.bf16 %v2192_v58, %v2192_v58 }
 0xa33   :  { %674 = vrot.lane.b32.xlu2 %v672_v61, %s1886_s4 }
 0xa35   :  { %v181_v46 = vpop.permute.xlu0 %180 }
 0xa36   :  { %v203_v63 = vmul.f32 %v2063_v40, %v181_v46 }
 0xa38   :  { %v212_v5 = vadd.f32 %v2065_v43, %v203_v63 }
 0xa3a   :  { %v218_v6 = vpack.c.bf16 %v213_v4, %v212_v5 }
 0xa3c   :  { %1636 = vmatmul.msk.bf16.gmra.mxu0 %vm240_vm5, %v218_v6 }
 0xa3d   :  { %v574_v8 = vpop.f32.mrf.mxu3 }
 0xa3e   :  { %578 = vst.msk [vmem:[#allocation3 + $0x10] sm:$0xff] %vm400_vm12, %v574_v8 }
 0xa45   :  { %v576_v2 = vpop.f32.mrf.mxu3 }
 0xa8d   :  { %v675_v9 = vpop.permute.xlu2 %674 }
 0xa8e   :  { %1665 = vmatmul.msk.bf16.vlgmr.msra.gmra.mxu3 %vm240_vm5, %v675_v9 }
 0xa8f   :  { %1031 = vmatpush.bf16.msra.mxu3 %v2093_v0  ;;  %v730_v0 = vsel %vm671_vm3, 1, %v1884_v37 }
 0xa93   :  { %1032 = vmatpush.bf16.msra.mxu3 %v2099_v26 }
 0xab9   :  { %v272_v12 = vpop.f32.mrf.mxu0 }
 0xaba   :  { %v273_v13 = vadd.f32 %v2075_v55, %v272_v12 }
 0xb11   :  { %v688_v1 = vpop.f32.mrf.mxu3 }
 0xb12   :  { %v692_v16 = vadd.f32 %v688_v1, %v273_v13 }
 0xb14   :  { %1796 = vtanh.f32 %v692_v16  ;;  %v1666_v21 = vmul.f32 -1.442695, %v692_v16 }
 0xb16   :  { %1798 = vpow2.f32 %v1666_v21  ;;  %v822_v21 = vsel %vm763_vm15, 1, %v1884_v37 }
 0xb19   :  { %v690_v17 = vpop.f32.mrf.mxu3 }
 0xb1a   :  { %v1797_v15 = vpop.eup %1796 }
 0xb1b   :  { %715 = vrot.lane.b32.xlu0 %v1797_v15, %s1885_s20 }
 0xb1c   :  { %v1799_v42 = vpop.eup %1798 }
 0xb1d   :  { %v696_v22 = vadd.f32 1.0, %v1799_v42 }
 0xb1f   :  { %1800 = vrcp.f32 %v696_v22  ;;  %v708_v27 = vand.u32 2147483648, %v696_v22  ;;  %vm702_vm6 = vweird.f32 %v696_v22  ;;  %v706_v28 = vand.u32 2147483647, %v696_v22 }
 0xb21   :  { %v709_v31 = vor.u32 1.1754944e-38, %v708_v27  ;;  %vm707_vm8 = vcmp.eq.f32.partialorder %v706_v28, 8.507059e+37 }
 0xb23   :  { %732 = vperm.xlu0 %1752, %v730_v0  }
 0xb25   :  { %v1801_v23 = vpop.eup %1800 }
 0xb26   :  { %v698_v26 = vmul.f32 %v1801_v23, %v696_v22  ;;  %vm703_vm4 = vweird.f32 %v1801_v23 }
 0xb27   :  { %vm704_vm7 = vmor %vm702_vm6, %vm703_vm4 }
 0xb28   :  { %v699_v24 = vsub.f32 1.0, %v698_v26 }
 0xb2a   :  { %v700_v25 = vmul.f32 %v1801_v23, %v699_v24 }
 0xb2b   :  { %1755 = vset.pattern.permute.xlu0 %v1884_v37 }
 0xb2c   :  { %v701_v41 = vadd.f32 %v1801_v23, %v700_v25 }
 0xb2e   :  { %v705_v30 = vsel %vm704_vm7, %v1801_v23, %v701_v41 }
 0xb2f   :  { %v710_v33 = vsel %vm707_vm8, %v709_v31, %v705_v30 }
 0xb30   :  { %v713_v34 = vmul.f32 %v710_v33, %v2183_v48 }
 0xb8d   :  { %v716_v32 = vpop.permute.xlu0 %715 }
 0xb8e   :  { %v718_v7 = vmul.f32 %v716_v32, %v710_v33 }
 0xb90   :  { %720 = vrot.lane.b32.xlu1 %v718_v7, %s1886_s4 }
 0xb95   :  { %v733_v39 = vpop.permute.xlu0 %732 }
 0xb96   :  { %vm734_vm9 = vcmp.eq.s32.totalorder %v733_v39, 1 }
 0xb98   :  { %652 = vrot.lane.b32.xlu1 %v650_v3, %s1886_s4 }
 0xc02   :  { %v721_v35 = vpop.permute.xlu1 %720 }
 0xc03   :  { %v723_v36 = vadd.f32 %v721_v35, %v713_v34 }
 0xc05   :  { %1802 = vtanh.f32 %v723_v36 }
 0xc0a   :  { %v653_v49 = vpop.permute.xlu1 %652 }
 0xc0b   :  { %v1803_v38 = vpop.eup %1802  ;;  %1664 = vmatmul.msk.bf16.vlgmr.msra.gmra.mxu2 %vm240_vm5, %v653_v49 }
 0xc0c   :  { %726 = vrot.lane.b32.xlu2 %v1803_v38, %s1885_s20  ;;  %961 = vmatpush.bf16.msra.mxu2 %v2039_v19  ;;  %v274_v19 = vpop.f32.mrf.mxu0 }
 0xc10   :  { %962 = vmatpush.bf16.msra.mxu2 %v2046_v20  ;;  %v275_v20 = vadd.f32 %v2075_v55, %v274_v19 }
 0xc66   :  { %v727_v44 = vpop.permute.xlu2 %726 }
 0xc67   :  { %v729_v45 = vmul.f32 %v727_v44, %v710_v33  ;;  %v2260_v44 = vld [vmem:[%s2484_s0 + $0x30] sm:$0xff] }
 0xc68   :  { %vm855_vm2 = vcmp.gt.f32.partialorder %v2260_v44, 0.0 }
 0xc69   :  { %v2223_v47 = vsel %vm734_vm9, %v729_v45, 0.0  ;;  %v736_v48 = vsel %vm734_vm9, %v729_v45, %v2195_v59  ;;  %v914_v45 = vsel %vm855_vm2, 1, %v1884_v37 }
 0xc6a   :  { %v764_v50 = vpack.c.bf16 %v736_v48, %v736_v48 }
 0xc6c   :  { %766 = vrot.lane.b32.xlu2 %v764_v50, %s1886_s4 }
 0xc8e   :  { %v666_v51 = vpop.f32.mrf.mxu2 }
 0xc8f   :  { %670 = vst.msk [vmem:[#allocation3 + $0x18] sm:$0xff] %vm400_vm12, %v666_v51 }
 0xc96   :  { %v668_v52 = vpop.f32.mrf.mxu2 }
 0xcc6   :  { %v767_v54 = vpop.permute.xlu2 %766 }
 0xcc7   :  { %1668 = vmatmul.msk.bf16.vlgmr.msrb.gmra.mxu2 %vm240_vm5, %v767_v54 }
 0xd4a   :  { %v780_v57 = vpop.f32.mrf.mxu2 }
 0xd4b   :  { %v784_v60 = vadd.f32 %v780_v57, %v275_v20 }
 0xd4d   :  { %1804 = vtanh.f32 %v784_v60  ;;  %v1669_v59 = vmul.f32 -1.442695, %v784_v60 }
 0xd4f   :  { %1806 = vpow2.f32 %v1669_v59 }
 0xd52   :  { %v782_v61 = vpop.f32.mrf.mxu2 }
 0xd53   :  { %v1805_v62 = vpop.eup %1804 }
 0xd54   :  { %807 = vrot.lane.b32.xlu1 %v1805_v62, %s1885_s20 }
 0xd55   :  { %v1807_v46 = vpop.eup %1806 }
 0xd56   :  { %v788_v63 = vadd.f32 1.0, %v1807_v46 }
 0xd58   :  { %1808 = vrcp.f32 %v788_v63  ;;  %v800_v9 = vand.u32 2147483648, %v788_v63  ;;  %vm794_vm11 = vweird.f32 %v788_v63  ;;  %v798_v12 = vand.u32 2147483647, %v788_v63 }
 0xd5a   :  { %v801_v1 = vor.u32 1.1754944e-38, %v800_v9  ;;  %vm799_vm14 = vcmp.eq.f32.partialorder %v798_v12, 8.507059e+37 }
 0xd5c   :  { %824 = vperm.xlu1 %1753, %v822_v21  }
 0xd5e   :  { %v1809_v4 = vpop.eup %1808 }
 0xd5f   :  { %v790_v5 = vmul.f32 %v1809_v4, %v788_v63  ;;  %vm795_vm10 = vweird.f32 %v1809_v4 }
 0xd60   :  { %vm796_vm13 = vmor %vm794_vm11, %vm795_vm10 }
 0xd61   :  { %v791_v6 = vsub.f32 1.0, %v790_v5 }
 0xd63   :  { %v792_v8 = vmul.f32 %v1809_v4, %v791_v6 }
 0xd64   :  { %1757 = vset.pattern.permute.xlu1 %v1884_v37 }
 0xd65   :  { %v793_v2 = vadd.f32 %v1809_v4, %v792_v8 }
 0xd67   :  { %v797_v13 = vsel %vm796_vm13, %v1809_v4, %v793_v2 }
 0xd68   :  { %v802_v17 = vsel %vm799_vm14, %v801_v1, %v797_v13 }
 0xd69   :  { %v805_v42 = vmul.f32 %v802_v17, %v723_v36 }
 0xdc6   :  { %v808_v16 = vpop.permute.xlu1 %807 }
 0xdc7   :  { %v810_v15 = vmul.f32 %v808_v16, %v802_v17 }
 0xdc9   :  { %812 = vrot.lane.b32.xlu2 %v810_v15, %s1886_s4 }
 0xdd1   :  { %190 = vperm.xlu2 %1754, %v2019_v53   ;;  %v825_v53 = vpop.permute.xlu1 %824 }
 0xdd2   :  { %vm826_vm1 = vcmp.eq.s32.totalorder %v825_v53, 1 }
 0xe23   :  { %v813_v22 = vpop.permute.xlu2 %812 }
 0xe24   :  { %v2236_v23 = vadd.f32 %v813_v22, %v805_v42 }
 0xe26   :  { %1810 = vtanh.f32 %v2236_v23 }
 0xe2b   :  { %v191_v41 = vpop.permute.xlu2 %190 }
 0xe2c   :  { %v1811_v0 = vpop.eup %1810  ;;  %v205_v28 = vmul.f32 %v2063_v40, %v191_v41 }
 0xe2d   :  { %818 = vrot.lane.b32.xlu0 %v1811_v0, %s1885_s20 }
 0xe35   :  { %195 = vperm.xlu0 %1755, %v2023_v56  }
 0xe3d   :  { %1756 = vset.pattern.permute.xlu0 %v1887_v18  ;;  %v214_v18 = vadd.f32 %v2065_v43, %v205_v28 }
 0xe3e   :  { %916 = vperm.xlu0 %1756, %v914_v45  }
 0xe9f   :  { %v819_v10 = vpop.permute.xlu0 %818 }
 0xea0   :  { %v821_v26 = vmul.f32 %v819_v10, %v802_v17 }
 0xea2   :  { %v2242_v24 = vsel %vm826_vm1, %v821_v26, 0.0  ;;  %v2244_v25 = vsel %vm826_vm1, %v821_v26, %v736_v48  ;;  %v2267_v48 = vld [vmem:[%s2484_s0 + $0x38] sm:$0xff] }
 0xea3   :  { %v856_v27 = vpack.c.bf16 %v2244_v25, %v2244_v25  ;;  %vm947_vm3 = vcmp.gt.f32.partialorder %v2267_v48, 0.0 }
 0xea4   :  { %v1006_v51 = vsel %vm947_vm3, 1, %v1884_v37 }
 0xea5   :  { %858 = vrot.lane.b32.xlu1 %v856_v27, %s1886_s4  ;;  %1008 = vperm.xlu0 %1756, %v1006_v51  }
 0xea7   :  { %v196_v30 = vpop.permute.xlu0 %195 }
 0xea8   :  { %v206_v56 = vmul.f32 %v2063_v40, %v196_v30 }
 0xeaa   :  { %v215_v31 = vadd.f32 %v2065_v43, %v206_v56 }
 0xeac   :  { %v219_v32 = vpack.c.bf16 %v215_v31, %v214_v18 }
 0xead   :  { %1758 = vset.pattern.permute.xlu0 %v1884_v37 }
 0xeae   :  { %1637 = vmatmul.msk.bf16.gmra.mxu0 %vm240_vm5, %v219_v32 }
 0xeb0   :  { %v917_v8 = vpop.permute.xlu0 %916 }
 0xeb1   :  { %vm918_vm9 = vcmp.eq.s32.totalorder %v917_v8, 1  ;;  %v2345_v8 = vld [vmem:[%s2491_s7 + $0x8] sm:$0xff] }
 0xeb2   :  { %1139 = vmatpush.bf16.msrb.mxu2 %v2345_v8 }
 0xf17   :  { %v859_v33 = vpop.permute.xlu1 %858 }
 0xf18   :  { %1671 = vmatmul.msk.bf16.vlgmr.msrb.gmra.mxu0 %vm240_vm5, %v859_v33  ;;  %v742_v33 = vpack.c.bf16 %v2223_v47, %v2223_v47 }
 0xf2b   :  { %v277_v7 = vpop.f32.mrf.mxu0 }
 0xf2c   :  { %v278_v34 = vadd.f32 %v2075_v55, %v277_v7 }
 0xf33   :  { %v279_v3 = vpop.f32.mrf.mxu0 }
 0xf34   :  { %v280_v17 = vadd.f32 %v2075_v55, %v279_v3 }
 0xf95   :  { %v872_v35 = vpop.f32.mrf.mxu0 }
 0xf96   :  { %v876_v36 = vadd.f32 %v872_v35, %v278_v34 }
 0xf98   :  { %1812 = vtanh.f32 %v876_v36  ;;  %v1672_v40 = vmul.f32 -1.442695, %v876_v36 }
 0xf9a   :  { %1814 = vpow2.f32 %v1672_v40 }
 0xf9d   :  { %v874_v49 = vpop.f32.mrf.mxu0 }
 0xf9e   :  { %v1813_v38 = vpop.eup %1812 }
 0xf9f   :  { %899 = vrot.lane.b32.xlu2 %v1813_v38, %s1885_s20  ;;  %v834_v38 = vpack.c.bf16 %v2242_v24, %v2242_v24 }
 0xfa0   :  { %v1815_v43 = vpop.eup %1814 }
 0xfa1   :  { %v880_v39 = vadd.f32 1.0, %v1815_v43  ;;  %v1009_v43 = vpop.permute.xlu0 %1008 }
 0xfa2   :  { %vm1010_vm15 = vcmp.eq.s32.totalorder %v1009_v43, 1 }
 0xfa3   :  { %1816 = vrcp.f32 %v880_v39  ;;  %v892_v57 = vand.u32 2147483648, %v880_v39  ;;  %vm886_vm6 = vweird.f32 %v880_v39  ;;  %v890_v60 = vand.u32 2147483647, %v880_v39 }
 0xfa5   :  { %v893_v62 = vor.u32 1.1754944e-38, %v892_v57  ;;  %vm891_vm8 = vcmp.eq.f32.partialorder %v890_v60, 8.507059e+37 }
 0xfa9   :  { %v1817_v50 = vpop.eup %1816 }
 0xfaa   :  { %v882_v52 = vmul.f32 %v1817_v50, %v880_v39  ;;  %vm887_vm4 = vweird.f32 %v1817_v50 }
 0xfab   :  { %vm888_vm7 = vmor %vm886_vm6, %vm887_vm4 }
 0xfac   :  { %v883_v54 = vsub.f32 1.0, %v882_v52 }
 0xfae   :  { %v884_v19 = vmul.f32 %v1817_v50, %v883_v54 }
 0xfb0   :  { %v885_v20 = vadd.f32 %v1817_v50, %v884_v19 }
 0xfb2   :  { %v889_v61 = vsel %vm888_vm7, %v1817_v50, %v885_v20 }
 0xfb3   :  { %v894_v46 = vsel %vm891_vm8, %v893_v62, %v889_v61 }
 0xfb4   :  { %v897_v4 = vmul.f32 %v894_v46, %v2236_v23 }
 0xff9   :  { %v900_v59 = vpop.permute.xlu2 %899 }
 0xffa   :  { %v902_v63 = vmul.f32 %v900_v59, %v894_v46 }
 0xffc   :  { %904 = vrot.lane.b32.xlu1 %v902_v63, %s1886_s4 }
0x106e   :  { %v905_v5 = vpop.permute.xlu1 %904 }
0x106f   :  { %v907_v6 = vadd.f32 %v905_v5, %v897_v4 }
0x1071   :  { %1818 = vtanh.f32 %v907_v6 }
0x1077   :  { %v1819_v37 = vpop.eup %1818 }
0x1078   :  { %910 = vrot.lane.b32.xlu2 %v1819_v37, %s1885_s20 }
0x10d2   :  { %v911_v2 = vpop.permute.xlu2 %910 }
0x10d3   :  { %v913_v9 = vmul.f32 %v911_v2, %v894_v46  ;;  %v2354_v2 = vld [vmem:[%s2491_s7] sm:$0xff]  ;;  %s1677_s7 = sld [smem:[#allocation4 + $0x8]] }
0x10d4   :  { %1140 = vmatpush.bf16.msrb.mxu2 %v2354_v2 }
0x10d5   :  { %v2275_v12 = vsel %vm918_vm9, %v913_v9, 0.0  ;;  %v920_v13 = vsel %vm918_vm9, %v913_v9, %v2244_v25 }
0x10d6   :  { %v948_v1 = vpack.c.bf16 %v920_v13, %v920_v13  ;;  %v926_v7 = vpack.c.bf16 %v2275_v12, %v2275_v12 }
0x10d8   :  { %950 = vrot.lane.b32.xlu1 %v948_v1, %s1886_s4  ;;  %v2369_v1 = vld [vmem:[#allocation3] sm:$0xff] }
0x10d9   :  { %v1112_v43 = vstv %s1677_s7 }
0x114a   :  { %v951_v16 = vpop.permute.xlu1 %950 }
0x114b   :  { %1674 = vmatmul.msk.bf16.vlgmr.msra.gmra.mxu2 %vm240_vm5, %v951_v16  ;;  %v2371_v16 = vld [vmem:[#allocation3 + $0x8] sm:$0xff] }
0x114c   :  { %1271 = vmatpush.bf16.msra.mxu2 %v2345_v8 }
0x1150   :  { %1272 = vmatpush.bf16.msra.mxu2 %v2354_v2 }
0x11ce   :  { %v964_v15 = vpop.f32.mrf.mxu2 }
0x11cf   :  { %v968_v21 = vadd.f32 %v964_v15, %v280_v17  ;;  %v2373_v17 = vld [vmem:[#allocation3 + $0x10] sm:$0xff] }
0x11d1   :  { %1820 = vtanh.f32 %v968_v21  ;;  %v1675_v23 = vmul.f32 -1.442695, %v968_v21 }
0x11d3   :  { %1822 = vpow2.f32 %v1675_v23 }
0x11d6   :  { %v966_v42 = vpop.f32.mrf.mxu2 }
0x11d7   :  { %v1821_v22 = vpop.eup %1820 }
0x11d8   :  { %991 = vrot.lane.b32.xlu2 %v1821_v22, %s1885_s20  ;;  %v2378_v22 = vld [vmem:[#allocation3 + $0x18] sm:$0xff] }
0x11d9   :  { %v1823_v0 = vpop.eup %1822 }
0x11da   :  { %v972_v53 = vadd.f32 1.0, %v1823_v0 }
0x11dc   :  { %1824 = vrcp.f32 %v972_v53  ;;  %v984_v28 = vand.u32 2147483648, %v972_v53  ;;  %vm978_vm11 = vweird.f32 %v972_v53  ;;  %v982_v55 = vand.u32 2147483647, %v972_v53 }
0x11de   :  { %v985_v56 = vor.u32 1.1754944e-38, %v984_v28  ;;  %vm983_vm14 = vcmp.eq.f32.partialorder %v982_v55, 8.507059e+37 }
0x11e2   :  { %v1825_v10 = vpop.eup %1824 }
0x11e3   :  { %v974_v26 = vmul.f32 %v1825_v10, %v972_v53  ;;  %vm979_vm10 = vweird.f32 %v1825_v10 }
0x11e4   :  { %vm980_vm13 = vmor %vm978_vm11, %vm979_vm10 }
0x11e5   :  { %v975_v25 = vsub.f32 1.0, %v974_v26 }
0x11e7   :  { %v976_v41 = vmul.f32 %v1825_v10, %v975_v25 }
0x11e9   :  { %v977_v27 = vadd.f32 %v1825_v10, %v976_v41 }
0x11eb   :  { %v981_v30 = vsel %vm980_vm13, %v1825_v10, %v977_v27 }
0x11ec   :  { %v986_v31 = vsel %vm983_vm14, %v985_v56, %v981_v30 }
0x11ed   :  { %v989_v3 = vmul.f32 %v986_v31, %v907_v6 }
0x1232   :  { %v992_v18 = vpop.permute.xlu2 %991 }
0x1233   :  { %v994_v32 = vmul.f32 %v992_v18, %v986_v31 }
0x1235   :  { %996 = vrot.lane.b32.xlu1 %v994_v32, %s1886_s4 }
0x123d   :  { %744 = vrot.lane.b32.xlu1 %v742_v33, %s1886_s4 }
0x1245   :  { %928 = vrot.lane.b32.xlu1 %v926_v7, %s1886_s4 }
0x124d   :  { %462 = vrot.lane.b32.xlu1 %v2132_v14, %s1886_s4 }
0x1255   :  { %738 = vrot.lane.b32.xlu1 %v2223_v47, %s1886_s4 }
0x12a7   :  { %v997_v34 = vpop.permute.xlu1 %996 }
0x12a8   :  { %v999_v35 = vadd.f32 %v997_v34, %v989_v3 }
0x12aa   :  { %1826 = vtanh.f32 %v999_v35 }
0x12af   :  { %v745_v36 = vpop.permute.xlu1 %744 }
0x12b0   :  { %v1827_v49 = vpop.eup %1826  ;;  %1667 = vmatmul.msk.bf16.vlgmr.msrb.gmra.mxu1 %vm240_vm5, %v745_v36 }
0x12b1   :  { %1002 = vrot.lane.b32.xlu2 %v1827_v49, %s1885_s20  ;;  %1105 = vmatpush.bf16.msrb.mxu1 %v2345_v8  ;;  %s1713_s20 = sld [smem:[#allocation4 + $0x4]] }
0x12b5   :  { %1106 = vmatpush.bf16.msrb.mxu1 %v2354_v2 }
0x12b7   :  { %v929_v40 = vpop.permute.xlu1 %928 }
0x12b9   :  { %836 = vrot.lane.b32.xlu2 %v834_v38, %s1886_s4 }
0x12bf   :  { %v463_v14 = vpop.permute.xlu1 %462 }
0x12c0   :  { %465 = vst.msk [vmem:[#allocation2 + $0x8] sm:$0xff] %vm240_vm5, %v463_v14  ;;  %1673 = vmatmul.msk.bf16.vlgmr.msra.gmra.mxu1 %vm240_vm5, %v929_v40 }
0x12c1   :  { %1238 = vmatpush.bf16.msra.mxu1 %v2345_v8 }
0x12c5   :  { %1239 = vmatpush.bf16.msra.mxu1 %v2354_v2 }
0x12c7   :  { %v739_v47 = vpop.permute.xlu1 %738 }
0x12c8   :  { %741 = vst.msk [vmem:[#allocation2 + $0x20] sm:$0xff] %vm240_vm5, %v739_v47 }
0x130b   :  { %v1003_v39 = vpop.permute.xlu2 %1002 }
0x130c   :  { %v1005_v45 = vmul.f32 %v1003_v39, %v986_v31 }
0x130e   :  { %v1011_v50 = vsel %vm1010_vm15, %v1005_v45, 0.0  ;;  %v2301_v51 = vsel %vm1010_vm15, %v1005_v45, %v920_v13 }
0x130f   :  { %v1018_v52 = vpack.c.bf16 %v1011_v50, %v1011_v50  ;;  %1014 = vrot.lane.b32.xlu1 %v1011_v50, %s1886_s4  ;;  %v1048_v54 = vpack.c.bf16 %v2301_v51, %v2301_v51 }
0x1311   :  { %1050 = vrot.lane.b32.xlu0 %v1048_v54, %s1886_s4  ;;  %1020 = vrot.lane.b32.xlu2 %v1018_v52, %s1886_s4 }
0x1313   :  { %v837_v19 = vpop.permute.xlu2 %836 }
0x1314   :  { %1670 = vmatmul.msk.bf16.vlgmr.msrb.gmra.mxu3 %vm240_vm5, %v837_v19 }
0x1315   :  { %1172 = vmatpush.bf16.msrb.mxu3 %v2345_v8 }
0x1319   :  { %364 = vrot.lane.b32.xlu0 %v2110_v29, %s1886_s4  ;;  %554 = vrot.lane.b32.xlu2 %v2160_v11, %s1886_s4  ;;  %v2324_v11 = vld [vmem:[%s2490_s6 + $0x8] sm:$0xff] }
0x131a   :  { %1073 = vmatpush.bf16.msra.mxu0 %v2324_v11  ;;  %1173 = vmatpush.bf16.msrb.mxu3 %v2354_v2 }
0x1321   :  { %646 = vrot.lane.b32.xlu0 %v2192_v58, %s1886_s4  ;;  %922 = vrot.lane.b32.xlu2 %v2275_v12, %s1886_s4  ;;  %v2330_v58 = vld [vmem:[%s2490_s6] sm:$0xff] }
0x1322   :  { %1074 = vmatpush.bf16.msra.mxu0 %v2330_v58 }
0x1326   :  { %1205 = vmatpush.bf16.msrb.mxu0 %v2345_v8 }
0x1329   :  { %830 = vrot.lane.b32.xlu0 %v2242_v24, %s1886_s4 }
0x132a   :  { %1206 = vmatpush.bf16.msrb.mxu0 %v2354_v2 }
0x132d   :  { %v758_v20 = vpop.f32.mrf.mxu1 }
0x132e   :  { %762 = vst.msk [vmem:[#allocation3 + $0x20] sm:$0xff] %vm400_vm12, %v758_v20 }
0x1335   :  { %v760_v57 = vpop.f32.mrf.mxu1  ;;  %v2382_v55 = vld [vmem:[#allocation3 + $0x20] sm:$0xff] }
0x133d   :  { %v942_v60 = vpop.f32.mrf.mxu1 }
0x133e   :  { %946 = vst.msk [vmem:[#allocation3 + $0x30] sm:$0xff] %vm400_vm12, %v942_v60 }
0x1345   :  { %v944_v29 = vpop.f32.mrf.mxu1  ;;  %v2390_v32 = vld [vmem:[#allocation3 + $0x30] sm:$0xff] }
0x136b   :  { %v1021_v24 = vpop.permute.xlu2 %1020 }
0x136c   :  { %1676 = vmatmul.msk.bf16.vlgmr.msra.gmra.mxu3 %vm240_vm5, %v1021_v24 }
0x136d   :  { %1304 = vmatpush.bf16.msra.mxu3 %v2345_v8 }
0x1371   :  { %1305 = vmatpush.bf16.msra.mxu3 %v2354_v2 }
0x1373   :  { %v555_v61 = vpop.permute.xlu2 %554 }
0x1374   :  { %557 = vst.msk [vmem:[#allocation2 + $0x10] sm:$0xff] %vm240_vm5, %v555_v61 }
0x137b   :  { %v923_v62 = vpop.permute.xlu2 %922 }
0x137c   :  { %925 = vst.msk [vmem:[#allocation2 + $0x30] sm:$0xff] %vm240_vm5, %v923_v62 }
0x1381   :  { %v1015_v59 = vpop.permute.xlu1 %1014 }
0x1382   :  { %1017 = vst.msk [vmem:[#allocation2 + $0x38] sm:$0xff] %vm240_vm5, %v1015_v59 }
0x1383   :  { %v1051_v46 = vpop.permute.xlu0 %1050 }
0x1384   :  { %1686 = vmatmul.msk.bf16.vlgmr.msra.gmra.mxu0 %vm240_vm5, %v1051_v46 }
0x1385   :  { %1337 = vmatpush.bf16.msra.mxu0 %v2345_v8 }
0x1389   :  { %1338 = vmatpush.bf16.msra.mxu0 %v2354_v2 }
0x138b   :  { %v365_v63 = vpop.permute.xlu0 %364 }
0x138c   :  { %367 = vst.msk [vmem:[#allocation2] sm:$0xff] %vm240_vm5, %v365_v63 }
0x1393   :  { %v647_v4 = vpop.permute.xlu0 %646 }
0x1394   :  { %649 = vst.msk [vmem:[#allocation2 + $0x18] sm:$0xff] %vm240_vm5, %v647_v4 }
0x1397   :  { %v850_v5 = vpop.f32.mrf.mxu3 }
0x1398   :  { %854 = vst.msk [vmem:[#allocation3 + $0x28] sm:$0xff] %vm400_vm12, %v850_v5 }
0x139b   :  { %v831_v6 = vpop.permute.xlu0 %830 }
0x139c   :  { %833 = vst.msk [vmem:[#allocation2 + $0x28] sm:$0xff] %vm240_vm5, %v831_v6 }
0x139f   :  { %v852_v37 = vpop.f32.mrf.mxu3  ;;  %v2386_v18 = vld [vmem:[#allocation3 + $0x28] sm:$0xff] }
0x13ef   :  { %v1034_v9 = vpop.f32.mrf.mxu3 }
0x13f0   :  { %1038 = vst.msk [vmem:[#allocation3 + $0x38] sm:$0xff] %vm400_vm12, %v1034_v9 }
0x13f7   :  { %v1036_v12 = vpop.f32.mrf.mxu3  ;;  %v2395_v7 = vld [vmem:[#allocation3 + $0x38] sm:$0xff] }
0x1401   :  { %v1076_v13 = vpop.f32.mrf.mxu0 }
0x1402   :  { %v1081_v15 = vadd.f32 %v2369_v1, %v1076_v13  ;;  %v1127_v21 = vadd.f32 %v2371_v16, %v1076_v13  ;;  %v1160_v42 = vadd.f32 %v2373_v17, %v1076_v13  ;;  %v1193_v23 = vadd.f32 %v2378_v22, %v1076_v13 }
0x1403   :  { %v1226_v56 = vadd.f32 %v2382_v55, %v1076_v13  ;;  %v1259_v31 = vadd.f32 %v2386_v18, %v1076_v13  ;;  %v1292_v33 = vadd.f32 %v2390_v32, %v1076_v13  ;;  %v1325_v3 = vadd.f32 %v2395_v7, %v1076_v13 }
0x1404   :  { %1828 = vtanh.f32 %v1081_v15 }
0x1405   :  { %1830 = vtanh.f32 %v1127_v21  ;;  %v1114_v21 = vld [vmem:[#allocation2] sm:$0xff] }
0x1406   :  { %1832 = vtanh.f32 %v1160_v42 }
0x1407   :  { %1834 = vtanh.f32 %v1193_v23 }
0x1408   :  { %1836 = vtanh.f32 %v1226_v56 }
0x1409   :  { %v1078_v0 = vpop.f32.mrf.mxu0  ;;  %1838 = vtanh.f32 %v1259_v31  ;;  %v1279_v31 = vld [vmem:[#allocation2 + $0x28] sm:$0xff] }
0x140a   :  { %v1829_v53 = vpop.eup %1828  ;;  %1840 = vtanh.f32 %v1292_v33  ;;  %v1213_v0 = vld [vmem:[#allocation2 + $0x18] sm:$0xff]  ;;  %v1246_v33 = vld [vmem:[#allocation2 + $0x20] sm:$0xff] }
0x140b   :  { %v1831_v10 = vpop.eup %1830  ;;  %v1083_v26 = vpack.c.bf16 %v1829_v53, %v1829_v53  ;;  %1842 = vtanh.f32 %v1325_v3 }
0x140c   :  { %v1833_v25 = vpop.eup %1832  ;;  %v1129_v41 = vpack.c.bf16 %v1831_v10, %v1831_v10 }
0x140d   :  { %v1835_v27 = vpop.eup %1834  ;;  %1695 = vmatmul.msk.bf16.vlgmr.msrb.gmra.mxu1 %vm240_vm5, %v1083_v26  ;;  %v1162_v28 = vpack.c.bf16 %v1833_v25, %v1833_v25  ;;  %v1147_v26 = vld [vmem:[#allocation2 + $0x8] sm:$0xff] }
0x140e   :  { %1696 = vmatmul.msk.bf16.vlgmr.msrb.gmra.mxu2 %vm240_vm5, %v1129_v41  ;;  %v1195_v30 = vpack.c.bf16 %v1835_v27, %v1835_v27  ;;  %v1837_v34 = vpop.eup %1836  ;;  %v1180_v27 = vld [vmem:[#allocation2 + $0x10] sm:$0xff] }
0x140f   :  { %1697 = vmatmul.msk.bf16.vlgmr.msrb.gmra.mxu3 %vm240_vm5, %v1162_v28  ;;  %1403 = vmatpush.bf16.msrb.mxu2 %v2345_v8  ;;  %v1839_v35 = vpop.eup %1838  ;;  %v1228_v38 = vpack.c.bf16 %v1837_v34, %v1837_v34 }
0x1410   :  { %1698 = vmatmul.msk.bf16.vlgmr.msrb.gmra.mxu0 %vm240_vm5, %v1195_v30  ;;  %1432 = vmatpush.bf16.msrb.mxu3 %v2345_v8  ;;  %v1841_v36 = vpop.eup %1840  ;;  %v1261_v40 = vpack.c.bf16 %v1839_v35, %v1839_v35 }
0x1411   :  { %1460 = vmatpush.bf16.msrb.mxu0 %v2345_v8  ;;  %v1843_v49 = vpop.eup %1842  ;;  %v1294_v14 = vpack.c.bf16 %v1841_v36, %v1841_v36  ;;  %v1312_v36 = vld [vmem:[#allocation2 + $0x30] sm:$0xff] }
0x1412   :  { %v1327_v47 = vpack.c.bf16 %v1843_v49, %v1843_v49 }
0x1413   :  { %1404 = vmatpush.bf16.msrb.mxu2 %v2354_v2 }
0x1414   :  { %1433 = vmatpush.bf16.msrb.mxu3 %v2354_v2 }
0x1415   :  { %1461 = vmatpush.bf16.msrb.mxu0 %v2354_v2 }
0x141d   :  { %1699 = vmatmul.msk.bf16.vlgmr.msra.gmra.mxu1 %vm240_vm5, %v1228_v38  ;;  %v1345_v38 = vld [vmem:[#allocation2 + $0x38] sm:$0xff] }
0x141e   :  { %1700 = vmatmul.msk.bf16.vlgmr.msra.gmra.mxu2 %vm240_vm5, %v1261_v40 }
0x141f   :  { %1701 = vmatmul.msk.bf16.vlgmr.msra.gmra.mxu3 %vm240_vm5, %v1294_v14  ;;  %1516 = vmatpush.bf16.msra.mxu2 %v2345_v8 }
0x1420   :  { %1702 = vmatmul.msk.bf16.vlgmr.msra.gmra.mxu0 %vm240_vm5, %v1327_v47  ;;  %1544 = vmatpush.bf16.msra.mxu3 %v2345_v8 }
0x1421   :  { %1572 = vmatpush.bf16.msra.mxu0 %v2345_v8 }
0x1423   :  { %1517 = vmatpush.bf16.msra.mxu2 %v2354_v2 }
0x1424   :  { %1545 = vmatpush.bf16.msra.mxu3 %v2354_v2 }
0x1425   :  { %1573 = vmatpush.bf16.msra.mxu0 %v2354_v2 }
0x148a   :  { %v1108_v39 = vpop.f32.mrf.mxu1 }
0x148b   :  { %v1113_v45 = vadd.f32 %v1112_v43, %v1108_v39 }
0x148d   :  { %v1208_v50 = vpop.f32.mrf.mxu0  ;;  %1117 = vperm.xlu2 %1754, %v1113_v45  }
0x148e   :  { %v1212_v57 = vadd.f32 %v1208_v50, %v1112_v43 }
0x1491   :  { %v1142_v52 = vpop.f32.mrf.mxu2 }
0x1492   :  { %v1146_v54 = vadd.f32 %v1142_v52, %v1112_v43  ;;  %v1175_v19 = vpop.f32.mrf.mxu3  ;;  %v1110_v20 = vpop.f32.mrf.mxu1 }
0x1493   :  { %v1179_v60 = vadd.f32 %v1175_v19, %v1112_v43 }
0x1494   :  { %1150 = vperm.xlu1 %1757, %v1146_v54  }
0x1495   :  { %v1210_v29 = vpop.f32.mrf.mxu0  ;;  %1183 = vperm.xlu0 %1758, %v1179_v60   ;;  %1216 = vperm.xlu2 %1754, %v1212_v57  }
0x1499   :  { %v1144_v24 = vpop.f32.mrf.mxu2 }
0x149a   :  { %v1177_v61 = vpop.f32.mrf.mxu3  ;;  %v1241_v62 = vpop.f32.mrf.mxu1 }
0x149b   :  { %v1245_v59 = vadd.f32 %v1241_v62, %v1112_v43 }
0x149d   :  { %v1340_v46 = vpop.f32.mrf.mxu0  ;;  %1249 = vperm.xlu1 %1757, %v1245_v59  }
0x149e   :  { %v1344_v37 = vadd.f32 %v1340_v46, %v1112_v43 }
0x14a1   :  { %v1274_v63 = vpop.f32.mrf.mxu2 }
0x14a2   :  { %v1278_v4 = vadd.f32 %v1274_v63, %v1112_v43  ;;  %v1307_v5 = vpop.f32.mrf.mxu3  ;;  %v1243_v6 = vpop.f32.mrf.mxu1 }
0x14a3   :  { %v1311_v9 = vadd.f32 %v1307_v5, %v1112_v43 }
0x14a4   :  { %1282 = vperm.xlu2 %1754, %v1278_v4  }
0x14a5   :  { %v1342_v12 = vpop.f32.mrf.mxu0  ;;  %1315 = vperm.xlu0 %1758, %v1311_v9   ;;  %1348 = vperm.xlu1 %1757, %v1344_v37  }
0x14a9   :  { %v1276_v13 = vpop.f32.mrf.mxu2 }
0x14aa   :  { %v1309_v15 = vpop.f32.mrf.mxu3 }
0x14e7   :  { %v1118_v42 = vpop.permute.xlu2 %1117 }
0x14e8   :  { %v1120_v23 = vmul.f32 %v1118_v42, %v1114_v21 }
0x14ea   :  { %1122 = vrot.lane.b32.xlu2 %v1120_v23, %s1888_s14 }
0x14ef   :  { %v1217_v53 = vpop.permute.xlu2 %1216 }
0x14f0   :  { %v1219_v10 = vmul.f32 %v1217_v53, %v1213_v0 }
0x14f2   :  { %1221 = vrot.lane.b32.xlu2 %v1219_v10, %s1888_s14 }
0x14fe   :  { %v1283_v56 = vpop.permute.xlu2 %1282 }
0x14ff   :  { %v1285_v34 = vmul.f32 %v1283_v56, %v1279_v31 }
0x1506   :  { %v1151_v25 = vpop.permute.xlu1 %1150 }
0x1507   :  { %v1153_v41 = vmul.f32 %v1151_v25, %v1147_v26  ;;  %v1184_v28 = vpop.permute.xlu0 %1183 }
0x1508   :  { %v1186_v30 = vmul.f32 %v1184_v28, %v1180_v27 }
0x1509   :  { %1155 = vrot.lane.b32.xlu0 %v1153_v41, %s1888_s14 }
0x150a   :  { %1188 = vrot.lane.b32.xlu1 %v1186_v30, %s1888_s14 }
0x150f   :  { %v1250_v3 = vpop.permute.xlu1 %1249 }
0x1510   :  { %v1252_v35 = vmul.f32 %v1250_v3, %v1246_v33 }
0x1512   :  { %1287 = vrot.lane.b32.xlu1 %v1285_v34, %s1888_s14  ;;  %1254 = vrot.lane.b32.xlu0 %v1252_v35, %s1888_s14 }
0x1517   :  { %v1316_v49 = vpop.permute.xlu0 %1315  ;;  %v1349_v40 = vpop.permute.xlu1 %1348 }
0x1518   :  { %v1318_v14 = vmul.f32 %v1316_v49, %v1312_v36  ;;  %v1351_v47 = vmul.f32 %v1349_v40, %v1345_v38 }
0x151a   :  { %1320 = vrot.lane.b32.xlu2 %v1318_v14, %s1888_s14  ;;  %1353 = vrot.lane.b32.xlu0 %v1351_v47, %s1888_s14  ;;  %v1410_v14 = vstv %s1703_s15 }
0x151b   :  { %1364 = vrot.lane.b32.xlu1 %v2324_v11, %s1888_s14 }
0x1522   :  { %1362 = vrot.lane.b32.xlu2 %v2330_v58, %s1888_s14 }
0x1544   :  { %v1123_v43 = vpop.permute.xlu2 %1122 }
0x1545   :  { %v1125_v39 = vadd.f32 %v1123_v43, %v2301_v51 }
0x154c   :  { %v1222_v54 = vpop.permute.xlu2 %1221 }
0x1574   :  { %v1321_v24 = vpop.permute.xlu2 %1320 }
0x157b   :  { %v1156_v45 = vpop.permute.xlu0 %1155 }
0x157c   :  { %v1189_v50 = vpop.permute.xlu1 %1188  ;;  %v1158_v52 = vadd.f32 %v1156_v45, %v1125_v39  ;;  %v1363_v63 = vpop.permute.xlu2 %1362 }
0x157e   :  { %v1191_v19 = vadd.f32 %v1189_v50, %v1158_v52  ;;  %v1862_v50 = vld [vmem:[%s2484_s0 + $0x8] sm:$0xff] }
0x1580   :  { %v1224_v20 = vadd.f32 %v1222_v54, %v1191_v19  ;;  %v1442_v54 = vstv %s1707_s16  ;;  %v1863_v19 = vld [vmem:[%s2484_s0] sm:$0xff] }
0x1584   :  { %v1255_v57 = vpop.permute.xlu0 %1254  ;;  %v1288_v60 = vpop.permute.xlu1 %1287 }
0x1585   :  { %v1257_v29 = vadd.f32 %v1255_v57, %v1224_v20 }
0x1587   :  { %v1290_v61 = vadd.f32 %v1288_v60, %v1257_v29  ;;  %v1414_v60 = vstv %s1413_s17 }
0x1589   :  { %v1323_v62 = vadd.f32 %v1321_v24, %v1290_v61 }
0x158c   :  { %v1354_v59 = vpop.permute.xlu0 %1353 }
0x158d   :  { %v1356_v11 = vadd.f32 %v1354_v59, %v1323_v62  ;;  %v1365_v46 = vpop.permute.xlu1 %1364 }
0x158e   :  { %1377 = vmatpush.bf16.msrb.mxu1 %v1365_v46 }
0x158f   :  { %v1358_v58 = vpack.c.bf16 %v1356_v11, %v1356_v11  ;;  %v1864_v11 = vld [vmem:[%s2484_s0 + $0x10] sm:$0xff] }
0x1591   :  { %1360 = vrot.lane.b32.xlu0 %v1358_v58, %s1886_s4 }
0x1592   :  { %1378 = vmatpush.bf16.msrb.mxu1 %v1363_v63 }
0x1596   :  { %1488 = vmatpush.bf16.msra.mxu1 %v2345_v8 }
0x159a   :  { %1489 = vmatpush.bf16.msra.mxu1 %v2354_v2 }
0x1603   :  { %v1361_v51 = vpop.permute.xlu0 %1360 }
0x1604   :  { %1704 = vmatmul.msk.bf16.vlgmr.msrb.gmra.mxu1 %vm240_vm5, %v1361_v51  ;;  %v1470_v51 = vstv %s1709_s18 }
0x1605   :  { %1600 = vmatpush.bf16.msrb.mxu1 %v2345_v8 }
0x1609   :  { %1601 = vmatpush.bf16.msrb.mxu1 %v2354_v2 }
0x1681   :  { %v1380_v4 = vpop.f32.mrf.mxu1 }
0x1682   :  { %1385 = vrot.lane.b32.xlu1 %v1380_v4, %s1886_s4 }
0x1689   :  { %v1382_v5 = vpop.f32.mrf.mxu1 }
0x16f4   :  { %v1386_v6 = vpop.permute.xlu1 %1385 }
0x16f5   :  { %v1445_v37 = vadd.f32 %v1386_v6, %v2373_v17  ;;  %v1417_v9 = vadd.f32 %v1386_v6, %v2371_v16  ;;  %v1388_v12 = vadd.f32 %v1386_v6, %v2369_v1  ;;  %v1529_v13 = vadd.f32 %v1386_v6, %v2386_v18 }
0x16f6   :  { %v1501_v8 = vadd.f32 %v1386_v6, %v2382_v55  ;;  %v1473_v2 = vadd.f32 %v1386_v6, %v2378_v22  ;;  %v1585_v16 = vadd.f32 %v1386_v6, %v2395_v7  ;;  %v1557_v22 = vadd.f32 %v1386_v6, %v2390_v32  ;;  %v1865_v6 = vld [vmem:[%s2484_s0 + $0x18] sm:$0xff] }
0x16f7   :  { %1844 = vtanh.f32 %v1445_v37 }
0x16f8   :  { %1846 = vtanh.f32 %v1417_v9 }
0x16f9   :  { %1848 = vtanh.f32 %v1388_v12  ;;  %v1866_v12 = vld [vmem:[%s2484_s0 + $0x20] sm:$0xff] }
0x16fa   :  { %1850 = vtanh.f32 %v1529_v13 }
0x16fb   :  { %1852 = vtanh.f32 %v1501_v8  ;;  %v1498_v8 = vstv %s1711_s2 }
0x16fc   :  { %1854 = vtanh.f32 %v1473_v2  ;;  %v1526_v2 = vstv %s1713_s20 }
0x16fd   :  { %v1845_v15 = vpop.eup %1844  ;;  %1856 = vtanh.f32 %v1585_v16 }
0x16fe   :  { %v1847_v21 = vpop.eup %1846  ;;  %v1447_v42 = vpack.c.bf16 %v1845_v15, %v1845_v15  ;;  %1858 = vtanh.f32 %v1557_v22 }
0x16ff   :  { %v1849_v23 = vpop.eup %1848  ;;  %v1419_v17 = vpack.c.bf16 %v1847_v21, %v1847_v21 }
0x1700   :  { %1449 = vrot.lane.b32.xlu1 %v1447_v42, %s1888_s14  ;;  %v1390_v1 = vpack.c.bf16 %v1849_v23, %v1849_v23  ;;  %v1851_v55 = vpop.eup %1850 }
0x1701   :  { %1421 = vrot.lane.b32.xlu0 %v1419_v17, %s1888_s14  ;;  %v1853_v18 = vpop.eup %1852  ;;  %v1531_v53 = vpack.c.bf16 %v1851_v55, %v1851_v55 }
0x1702   :  { %1392 = vrot.lane.b32.xlu2 %v1390_v1, %s1888_s14  ;;  %v1855_v0 = vpop.eup %1854  ;;  %v1503_v10 = vpack.c.bf16 %v1853_v18, %v1853_v18  ;;  %v1554_v18 = vstv %s1715_s22 }
0x1703   :  { %v1475_v26 = vpack.c.bf16 %v1855_v0, %v1855_v0  ;;  %v1857_v25 = vpop.eup %1856 }
0x1704   :  { %v1859_v41 = vpop.eup %1858  ;;  %v1587_v27 = vpack.c.bf16 %v1857_v25, %v1857_v25 }
0x1705   :  { %v1559_v7 = vpack.c.bf16 %v1859_v41, %v1859_v41  ;;  %v1582_v41 = vstv %s2466_s23 }
0x1708   :  { %1533 = vrot.lane.b32.xlu1 %v1531_v53, %s1888_s14 }
0x1709   :  { %1505 = vrot.lane.b32.xlu0 %v1503_v10, %s1888_s14 }
0x170a   :  { %1477 = vrot.lane.b32.xlu2 %v1475_v26, %s1888_s14  ;;  %v1867_v26 = vld [vmem:[%s2484_s0 + $0x28] sm:$0xff] }
0x1711   :  { %1589 = vrot.lane.b32.xlu0 %v1587_v27, %s1888_s14 }
0x1712   :  { %1561 = vrot.lane.b32.xlu2 %v1559_v7, %s1888_s14 }
0x175c   :  { %v1393_v32 = vpop.permute.xlu2 %1392 }
0x175d   :  { %1705 = vmatmul.msk.bf16.vlgmr.msrb.gmra.mxu2 %vm240_vm5, %v1393_v32 }
0x1764   :  { %v1478_v28 = vpop.permute.xlu2 %1477 }
0x1765   :  { %1710 = vmatmul.msk.bf16.vlgmr.msra.gmra.mxu1 %vm240_vm5, %v1478_v28  ;;  %v1610_v28 = vstv %s1719_s27 }
0x176c   :  { %v1562_v33 = vpop.permute.xlu2 %1561 }
0x1772   :  { %v1450_v30 = vpop.permute.xlu1 %1449 }
0x1773   :  { %v1422_v56 = vpop.permute.xlu0 %1421  ;;  %1708 = vmatmul.msk.bf16.vlgmr.msrb.gmra.mxu0 %vm240_vm5, %v1450_v30 }
0x1774   :  { %1706 = vmatmul.msk.bf16.vlgmr.msrb.gmra.mxu3 %vm240_vm5, %v1422_v56 }
0x177a   :  { %v1534_v3 = vpop.permute.xlu1 %1533 }
0x177b   :  { %v1506_v31 = vpop.permute.xlu0 %1505 }
0x177c   :  { %1712 = vmatmul.msk.bf16.vlgmr.msra.gmra.mxu2 %vm240_vm5, %v1506_v31 }
0x1783   :  { %v1590_v34 = vpop.permute.xlu0 %1589  ;;  %1716 = vmatmul.msk.bf16.vlgmr.msra.gmra.mxu0 %vm240_vm5, %v1562_v33 }
0x1784   :  { %1714 = vmatmul.msk.bf16.vlgmr.msra.gmra.mxu3 %vm240_vm5, %v1534_v3  ;;  %1718 = vmatmul.msk.bf16.vlgmr.msrb.gmra.mxu1 %vm240_vm5, %v1590_v34  ;;  %v1614_v34 = vstv %s1720_s28 }
0x17e0   :  { %v1406_v35 = vpop.f32.mrf.mxu2 }
0x17e1   :  { %v1411_v43 = vadd.f32 %v1410_v14, %v1406_v35 }
0x17e2   :  { %v1491_v36 = vpop.f32.mrf.mxu1 }
0x17e3   :  { %v1412_v20 = vmul.f32 %v1863_v19, %v1411_v43  ;;  %v1495_v59 = vadd.f32 %v1491_v36, %v1410_v14 }
0x17e5   :  { %v1415_v62 = vmul.f32 %v1414_v60, %v1412_v20  ;;  %v1496_v37 = vmul.f32 %v1865_v6, %v1495_v59 }
0x17e7   :  { %v1499_v17 = vmul.f32 %v1498_v8, %v1496_v37 }
0x17e8   :  { %v1408_v49 = vpop.f32.mrf.mxu2 }
0x17ea   :  { %v1493_v38 = vpop.f32.mrf.mxu1 }
0x17f0   :  { %v1463_v40 = vpop.f32.mrf.mxu0 }
0x17f1   :  { %v1467_v57 = vadd.f32 %v1463_v40, %v1410_v14 }
0x17f3   :  { %v1468_v46 = vmul.f32 %v1864_v11, %v1467_v57 }
0x17f5   :  { %v1471_v9 = vmul.f32 %v1470_v51, %v1468_v46 }
0x17f7   :  { %v1435_v47 = vpop.f32.mrf.mxu3 }
0x17f8   :  { %v1439_v39 = vadd.f32 %v1435_v47, %v1410_v14  ;;  %v1465_v45 = vpop.f32.mrf.mxu0 }
0x17fa   :  { %v1440_v52 = vmul.f32 %v1862_v50, %v1439_v39 }
0x17fc   :  { %v1443_v29 = vmul.f32 %v1442_v54, %v1440_v52 }
0x17fe   :  { %v1444_v5 = vadd.f32 %v1443_v29, %v1415_v62 }
0x17ff   :  { %v1437_v24 = vpop.f32.mrf.mxu3  ;;  %v1519_v61 = vpop.f32.mrf.mxu2 }
0x1800   :  { %v1523_v58 = vadd.f32 %v1519_v61, %v1410_v14  ;;  %v1575_v63 = vpop.f32.mrf.mxu0  ;;  %v1472_v15 = vadd.f32 %v1471_v9, %v1444_v5 }
0x1801   :  { %v1603_v4 = vpop.f32.mrf.mxu1  ;;  %v1579_v21 = vadd.f32 %v1575_v63, %v1410_v14 }
0x1802   :  { %v1524_v13 = vmul.f32 %v1866_v12, %v1523_v58  ;;  %v1607_v16 = vadd.f32 %v1603_v4, %v1410_v14  ;;  %v1500_v53 = vadd.f32 %v1499_v17, %v1472_v15 }
0x1803   :  { %v1580_v10 = vmul.f32 %v2260_v44, %v1579_v21 }
0x1804   :  { %v1527_v1 = vmul.f32 %v1526_v2, %v1524_v13  ;;  %v1608_v7 = vmul.f32 %v2267_v48, %v1607_v16 }
0x1805   :  { %v1583_v30 = vmul.f32 %v1582_v41, %v1580_v10 }
0x1806   :  { %v1528_v27 = vadd.f32 %v1527_v1, %v1500_v53  ;;  %v1611_v33 = vmul.f32 %v1610_v28, %v1608_v7 }
0x1807   :  { %v1521_v42 = vpop.f32.mrf.mxu2  ;;  %v1547_v23 = vpop.f32.mrf.mxu3 }
0x1808   :  { %v1551_v55 = vadd.f32 %v1547_v23, %v1410_v14  ;;  %v1577_v22 = vpop.f32.mrf.mxu0 }
0x1809   :  { %v1605_v0 = vpop.f32.mrf.mxu1 }
0x180a   :  { %v1552_v25 = vmul.f32 %v1867_v26, %v1551_v55 }
0x180c   :  { %v1555_v32 = vmul.f32 %v1554_v18, %v1552_v25 }
0x180e   :  { %v1556_v56 = vadd.f32 %v1555_v32, %v1528_v27 }
0x180f   :  { %v1549_v31 = vpop.f32.mrf.mxu3 }
0x1810   :  { %v1584_v3 = vadd.f32 %v1583_v30, %v1556_v56 }
0x1812   :  { %v1612_v35 = vadd.f32 %v1611_v33, %v1584_v3 }
0x1814   :  { %v1615_v36 = vadd.f32 %v1614_v34, %v1612_v35 }
0x1816   :  { %1617 = vrot.lane.b32.xlu1 %v1615_v36, %s1889_s10 }
0x1888   :  { %v1618_v44 = vpop.permute.xlu1 %1617 }
0x1889   :  { %1620 = vst.msk [vmem:[%s2493_s9] sm:$0xff] %vm55_vm0, %v1618_v44 }
0x188a   :  { %1625 = vsyncpa [#allocation5], 1 }

</bundles_post_ra>
